<compile_context>
chip_gen: v5e
topology: v5e:2x2
jax: 0.10.0
libtpu: 0.0.40
codegen_flags: <defaults>
</compile_context>

<pallas_src>
import functools

import jax
import jax.numpy as jnp
import numpy as np
from jax.experimental import pallas as pl
from jax.experimental.pallas import tpu as pltpu

LN_EPS = 1e-5


def _tpu_vmem_capacity():
    try:
        return int(pltpu.get_tpu_info().vmem_capacity_bytes)
    except Exception:
        return 128 * 1024 * 1024  # v5e/v6e default


_VMEM_CAP = _tpu_vmem_capacity()
VMEM_LIMIT = int(0.6 * _VMEM_CAP)                 # leave headroom for compiler scratch
_SMALL_VMEM = _VMEM_CAP <= 96 * 1024 * 1024       # v7x-class (64 MiB per TC)
Q_TILE_CAP = 256 if _SMALL_VMEM else 512
S_TILE_CAP = 256 if _SMALL_VMEM else 1024


def _layernorm(x, g, b):
    mu = jnp.mean(x, axis=-1, keepdims=True)
    var = jnp.mean(jnp.square(x - mu), axis=-1, keepdims=True)
    return (x - mu) * jax.lax.rsqrt(var + LN_EPS) * g + b


def _pick_tile(n, cap):
    """Largest divisor of n that is <= cap (multiple of 8 if n itself > cap)."""
    if n <= cap:
        return n
    for t in range(cap, 0, -1):
        if n % t == 0 and t % 8 == 0:
            return t
    # TODO(synk): ragged / prime S falls back to the full dim; mask-pad instead.
    return n


def _const_spec(shape):
    zeros = (0,) * len(shape)
    return pl.BlockSpec(shape, lambda *_: zeros)


# ---------------------------------------------------------------------------
# Kernels
# ---------------------------------------------------------------------------
def attn_layer_kernel(x_ref, g_ref, b_ref, wq_ref, wk_ref, wv_ref, wo_ref,
                      bo_ref, o_ref, q_scr, k_scr, v_scr, *, nhead, q_tile):
    S, D = x_ref.shape[1], x_ref.shape[2]
    HDh = wq_ref.shape[1]
    Dh = HDh // nhead

    # Per-batch prologue: LayerNorm + fused-head lane-dense projections,
    # written once into head-major bf16 scratch (reused by every query tile).
    @pl.when(pl.program_id(1) == 0)
    def _():
        x = x_ref[0].astype(jnp.float32)
        xn = _layernorm(x, g_ref[...], b_ref[...])
        xb = xn.astype(jnp.bfloat16)
        # 1/sqrt(Dh) is pre-folded into wq at parameter-prep time.
        qf = jnp.dot(xb, wq_ref[...],
                     preferred_element_type=jnp.float32).astype(jnp.bfloat16)
        kf = jnp.dot(xb, wk_ref[...],
                     preferred_element_type=jnp.float32).astype(jnp.bfloat16)
        vf = jnp.dot(xb, wv_ref[...],
                     preferred_element_type=jnp.float32).astype(jnp.bfloat16)
        for h in range(nhead):               # one amortized relayout per batch
            hs = h * Dh
            q_scr[h] = qf[:, hs:hs + Dh]
            k_scr[h] = kf[:, hs:hs + Dh]
            v_scr[h] = vf[:, hs:hs + Dh]

    qs = pl.multiple_of(pl.program_id(1) * q_tile, q_tile)

    acc = jnp.zeros((q_tile, D), jnp.float32)
    for h in range(nhead):                   # static head loop; per-head slices
        q_h = q_scr[h, pl.ds(qs, q_tile), :]                  # (tq, Dh) bf16
        k_h = k_scr[h]                                        # (S, Dh) bf16
        v_h = v_scr[h]                                        # (S, Dh) bf16
        s = jnp.einsum('qe,ke->qk', q_h, k_h,
                       preferred_element_type=jnp.float32)    # (tq, S) f32
        s = s - jnp.max(s, axis=-1, keepdims=True)
        p = jnp.exp(s)
        p = p * pl.reciprocal(jnp.sum(p, axis=-1, keepdims=True), approx=True)
        o_h = jnp.dot(p.astype(jnp.bfloat16), v_h,
                      preferred_element_type=jnp.float32)     # (tq, Dh)
        # Output projection folded into the head loop (no lane-axis concat).
        acc = acc + jnp.dot(o_h.astype(jnp.bfloat16), wo_ref[h],
                            preferred_element_type=jnp.float32)  # (tq, D)

    # Residual read at store time; lane-dense (tq, D) store.
    resid = x_ref[0, pl.ds(qs, q_tile), :].astype(jnp.float32)
    o_ref[0] = (acc + bo_ref[...] + resid).astype(o_ref.dtype)


def ff_layer_kernel(*refs, apply_final_norm):
    if apply_final_norm:
        (x_ref, g_ref, b_ref, w1_ref, b1_ref, w2_ref, b2_ref,
         fg_ref, fb_ref, o_ref) = refs
    else:
        (x_ref, g_ref, b_ref, w1_ref, b1_ref, w2_ref, b2_ref, o_ref) = refs
        fg_ref = fb_ref = None

    x = x_ref[0].astype(jnp.float32)                     # (ts, D)
    xn = _layernorm(x, g_ref[...], b_ref[...])
    h = jnp.dot(xn.astype(jnp.bfloat16), w1_ref[...],
                preferred_element_type=jnp.float32) + b1_ref[...]
    # TODO(synk): PyTorch nn.GELU() default is erf-exact; tanh approximation used.
    h = jax.nn.gelu(h, approximate=True).astype(jnp.bfloat16)   # single (ts,F) live
    y = jnp.dot(h, w2_ref[...],
                preferred_element_type=jnp.float32) + b2_ref[...]
    out = y + x                                          # residual
    if apply_final_norm:                                 # fused final LayerNorm
        out = _layernorm(out, fg_ref[...], fb_ref[...])
    o_ref[0] = out.astype(o_ref.dtype)


# ---------------------------------------------------------------------------
# pallas_call wrappers
# ---------------------------------------------------------------------------
def attn_block(x, p, nhead, q_tile):
    B, S, D = x.shape
    HDh = p["wq"].shape[1]
    Dh = HDh // nhead
    kernel = functools.partial(attn_layer_kernel, nhead=nhead, q_tile=q_tile)
    return pl.pallas_call(
        kernel,
        out_shape=jax.ShapeDtypeStruct((B, S, D), x.dtype),
        grid=(B, S // q_tile),
        in_specs=[
            # Full-S residual / K-V source: block index invariant over the q
            # axis, so it is DMA'd once per batch and stays VMEM-resident.
            pl.BlockSpec((1, S, D), lambda b, q: (b, 0, 0)),
            _const_spec((1, D)), _const_spec((1, D)),
            _const_spec((D, HDh)), _const_spec((D, HDh)), _const_spec((D, HDh)),
            _const_spec((nhead, Dh, D)), _const_spec((1, D)),
        ],
        out_specs=pl.BlockSpec((1, q_tile, D), lambda b, q: (b, q, 0)),
        scratch_shapes=[pltpu.VMEM((nhead, S, Dh), jnp.bfloat16)] * 3,
        compiler_params=pltpu.CompilerParams(
            dimension_semantics=("parallel", "arbitrary"),
            vmem_limit_bytes=VMEM_LIMIT),
    )(x, p["g"], p["b"], p["wq"], p["wk"], p["wv"], p["wo"], p["bo"])


def ff_block(x, p, s_tile, final_norm=None):
    B, S, D = x.shape
    F = p["w1"].shape[1]
    apply_final = final_norm is not None
    kernel = functools.partial(ff_layer_kernel, apply_final_norm=apply_final)
    in_specs = [
        pl.BlockSpec((1, s_tile, D), lambda b, s: (b, s, 0)),
        _const_spec((1, D)), _const_spec((1, D)),
        _const_spec((D, F)), _const_spec((1, F)),
        _const_spec((F, D)), _const_spec((1, D)),
    ]
    args = [x, p["g"], p["b"], p["w1"], p["b1"], p["w2"], p["b2"]]
    if apply_final:
        in_specs += [_const_spec((1, D)), _const_spec((1, D))]
        args += [final_norm[0], final_norm[1]]
    return pl.pallas_call(
        kernel,
        out_shape=jax.ShapeDtypeStruct((B, S, D), x.dtype),
        grid=(B, S // s_tile),
        in_specs=in_specs,
        out_specs=pl.BlockSpec((1, s_tile, D), lambda b, s: (b, s, 0)),
        compiler_params=pltpu.CompilerParams(
            dimension_semantics=("parallel", "parallel"),
            vmem_limit_bytes=VMEM_LIMIT),
    )(*args)


def encoder_forward(x, params, nhead, q_tile=None, s_tile=None):
    B, S, D = x.shape
    q_tile = q_tile or _pick_tile(S, Q_TILE_CAP)
    s_tile = s_tile or _pick_tile(S, S_TILE_CAP)
    n_layers = len(params["layers"])
    for li, layer in enumerate(params["layers"]):
        x = attn_block(x, layer["attn"], nhead, q_tile)
        fn = (params["norm_g"], params["norm_b"]) if li == n_layers - 1 else None
        x = ff_block(x, layer["ff"], s_tile, final_norm=fn)
    return x


# ---------------------------------------------------------------------------
# Pure-JAX reference (same math / same bf16 casts) for verification
# ---------------------------------------------------------------------------
def encoder_reference(x, params, nhead):
    for layer in params["layers"]:
        a = layer["attn"]
        HDh = a["wq"].shape[1]
        Dh = HDh // nhead

        xn = _layernorm(x, a["g"], a["b"])
        xb = xn.astype(jnp.bfloat16)
        # scale already folded into wq
        q = jnp.einsum('bsd,de->bse', xb, a["wq"],
                       preferred_element_type=jnp.float32)
        k = jnp.einsum('bsd,de->bse', xb, a["wk"],
                       preferred_element_type=jnp.float32)
        v = jnp.einsum('bsd,de->bse', xb, a["wv"],
                       preferred_element_type=jnp.float32)
        B, S, _ = q.shape
        qh = q.astype(jnp.bfloat16).reshape(B, S, nhead, Dh)
        kh = k.astype(jnp.bfloat16).reshape(B, S, nhead, Dh)
        vh = v.astype(jnp.bfloat16).reshape(B, S, nhead, Dh)
        s = jnp.einsum('bqhe,bkhe->bhqk', qh, kh,
                       preferred_element_type=jnp.float32)
        s = s - jnp.max(s, axis=-1, keepdims=True)
        p = jnp.exp(s)
        p = p / jnp.sum(p, axis=-1, keepdims=True)
        o = jnp.einsum('bhqk,bkhe->bqhe', p.astype(jnp.bfloat16), vh,
                       preferred_element_type=jnp.float32)
        ctx = o.reshape(B, S, HDh).astype(jnp.bfloat16)
        y = jnp.einsum('bse,ed->bsd', ctx, a["wo"].reshape(HDh, -1),
                       preferred_element_type=jnp.float32) + a["bo"]
        x = y + x

        f = layer["ff"]
        xn = _layernorm(x, f["g"], f["b"])
        h = jnp.einsum('bsd,df->bsf', xn.astype(jnp.bfloat16), f["w1"],
                       preferred_element_type=jnp.float32) + f["b1"]
        h = jax.nn.gelu(h, approximate=True)
        y = jnp.einsum('bsf,fd->bsd', h.astype(jnp.bfloat16), f["w2"],
                       preferred_element_type=jnp.float32) + f["b2"]
        x = y + x
    return _layernorm(x, params["norm_g"], params["norm_b"])


# ---------------------------------------------------------------------------
# Deterministic parameter construction (kernel layout: weights bf16,
# 1/sqrt(Dh) folded into wq, wo stored head-major (H, Dh, D)).
# ---------------------------------------------------------------------------
def init_params(key, d_model, nhead, num_layers, dim_feedforward):
    dh = d_model // nhead
    hdh = nhead * dh
    scale = 1.0 / (float(dh) ** 0.5)
    layers = []
    for _ in range(num_layers):
        key, k1, k2, k3, k4, k5, k6 = jax.random.split(key, 7)
        attn = dict(
            g=jnp.ones((1, d_model), jnp.float32),
            b=jnp.zeros((1, d_model), jnp.float32),
            wq=(0.02 * scale * jax.random.normal(k1, (d_model, hdh))).astype(jnp.bfloat16),
            wk=(0.02 * jax.random.normal(k2, (d_model, hdh))).astype(jnp.bfloat16),
            wv=(0.02 * jax.random.normal(k3, (d_model, hdh))).astype(jnp.bfloat16),
            wo=(0.02 * jax.random.normal(k4, (hdh, d_model))
                ).astype(jnp.bfloat16).reshape(nhead, dh, d_model),
            bo=jnp.zeros((1, d_model), jnp.float32),
        )
        ff = dict(
            g=jnp.ones((1, d_model), jnp.float32),
            b=jnp.zeros((1, d_model), jnp.float32),
            w1=(0.02 * jax.random.normal(k5, (d_model, dim_feedforward))).astype(jnp.bfloat16),
            b1=jnp.zeros((1, dim_feedforward), jnp.float32),
            w2=(0.02 * jax.random.normal(k6, (dim_feedforward, d_model))).astype(jnp.bfloat16),
            b2=jnp.zeros((1, d_model), jnp.float32),
        )
        layers.append(dict(attn=attn, ff=ff))
    return dict(
        layers=layers,
        norm_g=jnp.ones((1, d_model), jnp.float32),
        norm_b=jnp.zeros((1, d_model), jnp.float32),
    )


if __name__ == "__main__":
    B, S = 2, 16
    d_model, nhead, num_layers, dim_feedforward = 32, 4, 2, 64

    key = jax.random.PRNGKey(0)
    key, xk = jax.random.split(key)
    x = jax.random.normal(xk, (B, S, d_model), jnp.float32)
    params = init_params(key, d_model, nhead, num_layers, dim_feedforward)

    # q_tile/s_tile = 8 so the multi-tile grid path (and the per-batch
    # scratch-fill prologue) is exercised even at these small shapes.
    out = jax.block_until_ready(
        encoder_forward(x, params, nhead, q_tile=8, s_tile=8))
    ref = jax.block_until_ready(encoder_reference(x, params, nhead))

    np.testing.assert_allclose(np.asarray(out), np.asarray(ref),
                               rtol=2e-2, atol=2e-2)
    print("KERNEL_OK")
</pallas_src>

<mosaic_0001>
module attributes {stable_mosaic.version = 11 : i64} {
  func.func @attn_layer_kernel(%arg0: i32, %arg1: i32, %arg2: memref<1x16x32xf32, #tpu.memory_space<vmem>>, %arg3: memref<1x32xf32, #tpu.memory_space<vmem>>, %arg4: memref<1x32xf32, #tpu.memory_space<vmem>>, %arg5: memref<32x32xbf16, #tpu.memory_space<vmem>>, %arg6: memref<32x32xbf16, #tpu.memory_space<vmem>>, %arg7: memref<32x32xbf16, #tpu.memory_space<vmem>>, %arg8: memref<4x8x32xbf16, #tpu.memory_space<vmem>>, %arg9: memref<1x32xf32, #tpu.memory_space<vmem>>, %arg10: memref<1x8x32xf32, #tpu.memory_space<vmem>>, %arg11: memref<4x16x8xbf16, #tpu.memory_space<vmem>>, %arg12: memref<4x16x8xbf16, #tpu.memory_space<vmem>>, %arg13: memref<4x16x8xbf16, #tpu.memory_space<vmem>>) attributes {dimension_semantics = [#tpu.dimension_semantics<parallel>, #tpu.dimension_semantics<arbitrary>], iteration_bounds = array<i64: 2, 2>, scalar_prefetch = 0 : i64, scratch_operands = 3 : i64, tpu.core_type = #tpu.core_type<tc>, window_params = [{transform_indices = @transform_0, window_bounds = array<i64: 1, 16, 32>}, {pipeline_mode = #tpu.pipeline_mode<synchronous>, transform_indices = @transform_1, window_bounds = array<i64: 1, 32>}, {pipeline_mode = #tpu.pipeline_mode<synchronous>, transform_indices = @transform_2, window_bounds = array<i64: 1, 32>}, {pipeline_mode = #tpu.pipeline_mode<synchronous>, transform_indices = @transform_3, window_bounds = array<i64: 32, 32>}, {pipeline_mode = #tpu.pipeline_mode<synchronous>, transform_indices = @transform_4, window_bounds = array<i64: 32, 32>}, {pipeline_mode = #tpu.pipeline_mode<synchronous>, transform_indices = @transform_5, window_bounds = array<i64: 32, 32>}, {pipeline_mode = #tpu.pipeline_mode<synchronous>, transform_indices = @transform_6, window_bounds = array<i64: 4, 8, 32>}, {pipeline_mode = #tpu.pipeline_mode<synchronous>, transform_indices = @transform_7, window_bounds = array<i64: 1, 32>}, {transform_indices = @transform_8, window_bounds = array<i64: 1, 8, 32>}]} {
    %c0_i32 = arith.constant 0 : i32
    %0 = arith.cmpi eq, %arg1, %c0_i32 : i32
    %1 = arith.extui %0 : i1 to i32
    %c0_i32_0 = arith.constant 0 : i32
    %2 = arith.cmpi ne, %1, %c0_i32_0 : i32
    scf.if %2 {
      %c0_68 = arith.constant 0 : index
      %c0_69 = arith.constant 0 : index
      %c0_70 = arith.constant 0 : index
      %116 = vector.load %arg2[%c0_68, %c0_69, %c0_70] : memref<1x16x32xf32, #tpu.memory_space<vmem>>, vector<1x16x32xf32>
      %117 = vector.shape_cast %116 : vector<1x16x32xf32> to vector<16x32xf32>
      %c0_71 = arith.constant 0 : index
      %c0_72 = arith.constant 0 : index
      %118 = vector.load %arg3[%c0_71, %c0_72] : memref<1x32xf32, #tpu.memory_space<vmem>>, vector<1x32xf32>
      %c0_73 = arith.constant 0 : index
      %c0_74 = arith.constant 0 : index
      %119 = vector.load %arg4[%c0_73, %c0_74] : memref<1x32xf32, #tpu.memory_space<vmem>>, vector<1x32xf32>
      %cst_75 = arith.constant dense<0.000000e+00> : vector<16xf32>
      %120 = vector.multi_reduction <add>, %117, %cst_75 [1] : vector<16x32xf32> to vector<16xf32>
      %121 = vector.shape_cast %120 : vector<16xf32> to vector<16x1xf32>
      %cst_76 = arith.constant 3.200000e+01 : f32
      %122 = vector.broadcast %cst_76 : f32 to vector<16x1xf32>
      %123 = arith.divf %121, %122 : vector<16x1xf32>
      %124 = vector.broadcast %123 : vector<16x1xf32> to vector<16x32xf32>
      %125 = arith.subf %117, %124 : vector<16x32xf32>
      %126 = arith.mulf %125, %125 : vector<16x32xf32>
      %cst_77 = arith.constant dense<0.000000e+00> : vector<16xf32>
      %127 = vector.multi_reduction <add>, %126, %cst_77 [1] : vector<16x32xf32> to vector<16xf32>
      %128 = vector.shape_cast %127 : vector<16xf32> to vector<16x1xf32>
      %cst_78 = arith.constant 3.200000e+01 : f32
      %129 = vector.broadcast %cst_78 : f32 to vector<16x1xf32>
      %130 = arith.divf %128, %129 : vector<16x1xf32>
      %131 = vector.broadcast %123 : vector<16x1xf32> to vector<16x32xf32>
      %132 = arith.subf %117, %131 : vector<16x32xf32>
      %cst_79 = arith.constant 9.99999974E-6 : f32
      %133 = vector.broadcast %cst_79 : f32 to vector<16x1xf32>
      %134 = arith.addf %130, %133 : vector<16x1xf32>
      %135 = math.rsqrt %134 : vector<16x1xf32>
      %136 = vector.broadcast %135 : vector<16x1xf32> to vector<16x32xf32>
      %137 = arith.mulf %132, %136 : vector<16x32xf32>
      %138 = vector.broadcast %118 : vector<1x32xf32> to vector<16x32xf32>
      %139 = arith.mulf %137, %138 : vector<16x32xf32>
      %140 = vector.broadcast %119 : vector<1x32xf32> to vector<16x32xf32>
      %141 = arith.addf %139, %140 : vector<16x32xf32>
      %142 = arith.truncf %141 : vector<16x32xf32> to vector<16x32xbf16>
      %c0_80 = arith.constant 0 : index
      %c0_81 = arith.constant 0 : index
      %143 = vector.load %arg5[%c0_80, %c0_81] : memref<32x32xbf16, #tpu.memory_space<vmem>>, vector<32x32xbf16>
      %cst_82 = arith.constant dense<0.000000e+00> : vector<16x32xf32>
      %144 = tpu.matmul %142, %143, %cst_82 {dimension_numbers = #tpu.dot_dimension_numbers<[1], [0], [0], [1], [0, 0, 1, 1], [], []>} : vector<16x32xbf16>, vector<32x32xbf16>, vector<16x32xf32> -> vector<16x32xf32>
      %145 = arith.truncf %144 : vector<16x32xf32> to vector<16x32xbf16>
      %c0_83 = arith.constant 0 : index
      %c0_84 = arith.constant 0 : index
      %146 = vector.load %arg6[%c0_83, %c0_84] : memref<32x32xbf16, #tpu.memory_space<vmem>>, vector<32x32xbf16>
      %cst_85 = arith.constant dense<0.000000e+00> : vector<16x32xf32>
      %147 = tpu.matmul %142, %146, %cst_85 {dimension_numbers = #tpu.dot_dimension_numbers<[1], [0], [0], [1], [0, 0, 1, 1], [], []>} : vector<16x32xbf16>, vector<32x32xbf16>, vector<16x32xf32> -> vector<16x32xf32>
      %148 = arith.truncf %147 : vector<16x32xf32> to vector<16x32xbf16>
      %c0_86 = arith.constant 0 : index
      %c0_87 = arith.constant 0 : index
      %149 = vector.load %arg7[%c0_86, %c0_87] : memref<32x32xbf16, #tpu.memory_space<vmem>>, vector<32x32xbf16>
      %cst_88 = arith.constant dense<0.000000e+00> : vector<16x32xf32>
      %150 = tpu.matmul %142, %149, %cst_88 {dimension_numbers = #tpu.dot_dimension_numbers<[1], [0], [0], [1], [0, 0, 1, 1], [], []>} : vector<16x32xbf16>, vector<32x32xbf16>, vector<16x32xf32> -> vector<16x32xf32>
      %151 = arith.truncf %150 : vector<16x32xf32> to vector<16x32xbf16>
      %152 = vector.extract_strided_slice %145 {offsets = [0, 0], sizes = [16, 8], strides = [1, 1]} : vector<16x32xbf16> to vector<16x8xbf16>
      %c0_89 = arith.constant 0 : index
      %c0_90 = arith.constant 0 : index
      %c0_91 = arith.constant 0 : index
      %153 = vector.load %arg11[%c0_89, %c0_90, %c0_91] : memref<4x16x8xbf16, #tpu.memory_space<vmem>>, vector<1x16x8xbf16>
      %154 = vector.shape_cast %153 : vector<1x16x8xbf16> to vector<16x8xbf16>
      %155 = vector.shape_cast %152 : vector<16x8xbf16> to vector<1x16x8xbf16>
      tpu.vector_store %arg11[%c0_89, %c0_90, %c0_91], %155 {strides = array<i32>} : memref<4x16x8xbf16, #tpu.memory_space<vmem>>, vector<1x16x8xbf16>,
      %156 = vector.extract_strided_slice %148 {offsets = [0, 0], sizes = [16, 8], strides = [1, 1]} : vector<16x32xbf16> to vector<16x8xbf16>
      %c0_92 = arith.constant 0 : index
      %c0_93 = arith.constant 0 : index
      %c0_94 = arith.constant 0 : index
      %157 = vector.load %arg12[%c0_92, %c0_93, %c0_94] : memref<4x16x8xbf16, #tpu.memory_space<vmem>>, vector<1x16x8xbf16>
      %158 = vector.shape_cast %157 : vector<1x16x8xbf16> to vector<16x8xbf16>
      %159 = vector.shape_cast %156 : vector<16x8xbf16> to vector<1x16x8xbf16>
      tpu.vector_store %arg12[%c0_92, %c0_93, %c0_94], %159 {strides = array<i32>} : memref<4x16x8xbf16, #tpu.memory_space<vmem>>, vector<1x16x8xbf16>,
      %160 = vector.extract_strided_slice %151 {offsets = [0, 0], sizes = [16, 8], strides = [1, 1]} : vector<16x32xbf16> to vector<16x8xbf16>
      %c0_95 = arith.constant 0 : index
      %c0_96 = arith.constant 0 : index
      %c0_97 = arith.constant 0 : index
      %161 = vector.load %arg13[%c0_95, %c0_96, %c0_97] : memref<4x16x8xbf16, #tpu.memory_space<vmem>>, vector<1x16x8xbf16>
      %162 = vector.shape_cast %161 : vector<1x16x8xbf16> to vector<16x8xbf16>
      %163 = vector.shape_cast %160 : vector<16x8xbf16> to vector<1x16x8xbf16>
      tpu.vector_store %arg13[%c0_95, %c0_96, %c0_97], %163 {strides = array<i32>} : memref<4x16x8xbf16, #tpu.memory_space<vmem>>, vector<1x16x8xbf16>,
      %164 = vector.extract_strided_slice %145 {offsets = [0, 8], sizes = [16, 8], strides = [1, 1]} : vector<16x32xbf16> to vector<16x8xbf16>
      %c1_98 = arith.constant 1 : index
      %c0_99 = arith.constant 0 : index
      %c0_100 = arith.constant 0 : index
      %165 = vector.load %arg11[%c1_98, %c0_99, %c0_100] : memref<4x16x8xbf16, #tpu.memory_space<vmem>>, vector<1x16x8xbf16>
      %166 = vector.shape_cast %165 : vector<1x16x8xbf16> to vector<16x8xbf16>
      %167 = vector.shape_cast %164 : vector<16x8xbf16> to vector<1x16x8xbf16>
      tpu.vector_store %arg11[%c1_98, %c0_99, %c0_100], %167 {strides = array<i32>} : memref<4x16x8xbf16, #tpu.memory_space<vmem>>, vector<1x16x8xbf16>,
      %168 = vector.extract_strided_slice %148 {offsets = [0, 8], sizes = [16, 8], strides = [1, 1]} : vector<16x32xbf16> to vector<16x8xbf16>
      %c1_101 = arith.constant 1 : index
      %c0_102 = arith.constant 0 : index
      %c0_103 = arith.constant 0 : index
      %169 = vector.load %arg12[%c1_101, %c0_102, %c0_103] : memref<4x16x8xbf16, #tpu.memory_space<vmem>>, vector<1x16x8xbf16>
      %170 = vector.shape_cast %169 : vector<1x16x8xbf16> to vector<16x8xbf16>
      %171 = vector.shape_cast %168 : vector<16x8xbf16> to vector<1x16x8xbf16>
      tpu.vector_store %arg12[%c1_101, %c0_102, %c0_103], %171 {strides = array<i32>} : memref<4x16x8xbf16, #tpu.memory_space<vmem>>, vector<1x16x8xbf16>,
      %172 = vector.extract_strided_slice %151 {offsets = [0, 8], sizes = [16, 8], strides = [1, 1]} : vector<16x32xbf16> to vector<16x8xbf16>
      %c1_104 = arith.constant 1 : index
      %c0_105 = arith.constant 0 : index
      %c0_106 = arith.constant 0 : index
      %173 = vector.load %arg13[%c1_104, %c0_105, %c0_106] : memref<4x16x8xbf16, #tpu.memory_space<vmem>>, vector<1x16x8xbf16>
      %174 = vector.shape_cast %173 : vector<1x16x8xbf16> to vector<16x8xbf16>
      %175 = vector.shape_cast %172 : vector<16x8xbf16> to vector<1x16x8xbf16>
      tpu.vector_store %arg13[%c1_104, %c0_105, %c0_106], %175 {strides = array<i32>} : memref<4x16x8xbf16, #tpu.memory_space<vmem>>, vector<1x16x8xbf16>,
      %176 = vector.extract_strided_slice %145 {offsets = [0, 16], sizes = [16, 8], strides = [1, 1]} : vector<16x32xbf16> to vector<16x8xbf16>
      %c2_107 = arith.constant 2 : index
      %c0_108 = arith.constant 0 : index
      %c0_109 = arith.constant 0 : index
      %177 = vector.load %arg11[%c2_107, %c0_108, %c0_109] : memref<4x16x8xbf16, #tpu.memory_space<vmem>>, vector<1x16x8xbf16>
      %178 = vector.shape_cast %177 : vector<1x16x8xbf16> to vector<16x8xbf16>
      %179 = vector.shape_cast %176 : vector<16x8xbf16> to vector<1x16x8xbf16>
      tpu.vector_store %arg11[%c2_107, %c0_108, %c0_109], %179 {strides = array<i32>} : memref<4x16x8xbf16, #tpu.memory_space<vmem>>, vector<1x16x8xbf16>,
      %180 = vector.extract_strided_slice %148 {offsets = [0, 16], sizes = [16, 8], strides = [1, 1]} : vector<16x32xbf16> to vector<16x8xbf16>
      %c2_110 = arith.constant 2 : index
      %c0_111 = arith.constant 0 : index
      %c0_112 = arith.constant 0 : index
      %181 = vector.load %arg12[%c2_110, %c0_111, %c0_112] : memref<4x16x8xbf16, #tpu.memory_space<vmem>>, vector<1x16x8xbf16>
      %182 = vector.shape_cast %181 : vector<1x16x8xbf16> to vector<16x8xbf16>
      %183 = vector.shape_cast %180 : vector<16x8xbf16> to vector<1x16x8xbf16>
      tpu.vector_store %arg12[%c2_110, %c0_111, %c0_112], %183 {strides = array<i32>} : memref<4x16x8xbf16, #tpu.memory_space<vmem>>, vector<1x16x8xbf16>,
      %184 = vector.extract_strided_slice %151 {offsets = [0, 16], sizes = [16, 8], strides = [1, 1]} : vector<16x32xbf16> to vector<16x8xbf16>
      %c2_113 = arith.constant 2 : index
      %c0_114 = arith.constant 0 : index
      %c0_115 = arith.constant 0 : index
      %185 = vector.load %arg13[%c2_113, %c0_114, %c0_115] : memref<4x16x8xbf16, #tpu.memory_space<vmem>>, vector<1x16x8xbf16>
      %186 = vector.shape_cast %185 : vector<1x16x8xbf16> to vector<16x8xbf16>
      %187 = vector.shape_cast %184 : vector<16x8xbf16> to vector<1x16x8xbf16>
      tpu.vector_store %arg13[%c2_113, %c0_114, %c0_115], %187 {strides = array<i32>} : memref<4x16x8xbf16, #tpu.memory_space<vmem>>, vector<1x16x8xbf16>,
      %188 = vector.extract_strided_slice %145 {offsets = [0, 24], sizes = [16, 8], strides = [1, 1]} : vector<16x32xbf16> to vector<16x8xbf16>
      %c3_116 = arith.constant 3 : index
      %c0_117 = arith.constant 0 : index
      %c0_118 = arith.constant 0 : index
      %189 = vector.load %arg11[%c3_116, %c0_117, %c0_118] : memref<4x16x8xbf16, #tpu.memory_space<vmem>>, vector<1x16x8xbf16>
      %190 = vector.shape_cast %189 : vector<1x16x8xbf16> to vector<16x8xbf16>
      %191 = vector.shape_cast %188 : vector<16x8xbf16> to vector<1x16x8xbf16>
      tpu.vector_store %arg11[%c3_116, %c0_117, %c0_118], %191 {strides = array<i32>} : memref<4x16x8xbf16, #tpu.memory_space<vmem>>, vector<1x16x8xbf16>,
      %192 = vector.extract_strided_slice %148 {offsets = [0, 24], sizes = [16, 8], strides = [1, 1]} : vector<16x32xbf16> to vector<16x8xbf16>
      %c3_119 = arith.constant 3 : index
      %c0_120 = arith.constant 0 : index
      %c0_121 = arith.constant 0 : index
      %193 = vector.load %arg12[%c3_119, %c0_120, %c0_121] : memref<4x16x8xbf16, #tpu.memory_space<vmem>>, vector<1x16x8xbf16>
      %194 = vector.shape_cast %193 : vector<1x16x8xbf16> to vector<16x8xbf16>
      %195 = vector.shape_cast %192 : vector<16x8xbf16> to vector<1x16x8xbf16>
      tpu.vector_store %arg12[%c3_119, %c0_120, %c0_121], %195 {strides = array<i32>} : memref<4x16x8xbf16, #tpu.memory_space<vmem>>, vector<1x16x8xbf16>,
      %196 = vector.extract_strided_slice %151 {offsets = [0, 24], sizes = [16, 8], strides = [1, 1]} : vector<16x32xbf16> to vector<16x8xbf16>
      %c3_122 = arith.constant 3 : index
      %c0_123 = arith.constant 0 : index
      %c0_124 = arith.constant 0 : index
      %197 = vector.load %arg13[%c3_122, %c0_123, %c0_124] : memref<4x16x8xbf16, #tpu.memory_space<vmem>>, vector<1x16x8xbf16>
      %198 = vector.shape_cast %197 : vector<1x16x8xbf16> to vector<16x8xbf16>
      %199 = vector.shape_cast %196 : vector<16x8xbf16> to vector<1x16x8xbf16>
      tpu.vector_store %arg13[%c3_122, %c0_123, %c0_124], %199 {strides = array<i32>} : memref<4x16x8xbf16, #tpu.memory_space<vmem>>, vector<1x16x8xbf16>,
    } else {
    }
    %c8_i32 = arith.constant 8 : i32
    %3 = arith.muli %arg1, %c8_i32 : i32
    %4 = tpu.assume_multiple %3, 8 : i32
    %cst = arith.constant 0.000000e+00 : f32
    %5 = vector.broadcast %cst : f32 to vector<8x32xf32>
    %c0 = arith.constant 0 : index
    %6 = arith.index_cast %4 : i32 to index
    %c0_1 = arith.constant 0 : index
    %7 = vector.load %arg11[%c0, %6, %c0_1] : memref<4x16x8xbf16, #tpu.memory_space<vmem>>, vector<1x8x8xbf16>
    %8 = vector.shape_cast %7 : vector<1x8x8xbf16> to vector<8x8xbf16>
    %c0_2 = arith.constant 0 : index
    %c0_3 = arith.constant 0 : index
    %c0_4 = arith.constant 0 : index
    %9 = vector.load %arg12[%c0_2, %c0_3, %c0_4] : memref<4x16x8xbf16, #tpu.memory_space<vmem>>, vector<1x16x8xbf16>
    %10 = vector.shape_cast %9 : vector<1x16x8xbf16> to vector<16x8xbf16>
    %c0_5 = arith.constant 0 : index
    %c0_6 = arith.constant 0 : index
    %c0_7 = arith.constant 0 : index
    %11 = vector.load %arg13[%c0_5, %c0_6, %c0_7] : memref<4x16x8xbf16, #tpu.memory_space<vmem>>, vector<1x16x8xbf16>
    %12 = vector.shape_cast %11 : vector<1x16x8xbf16> to vector<16x8xbf16>
    "tpu.trace_start"() <{level = 10 : i32, message = "qe,ke->qk"}> : () -> ()
    %cst_8 = arith.constant dense<0.000000e+00> : vector<8x16xf32>
    %13 = tpu.matmul %8, %10, %cst_8 {dimension_numbers = #tpu.dot_dimension_numbers<[1], [1], [0], [0], [0, 0, 1, 0], [], []>} : vector<8x8xbf16>, vector<16x8xbf16>, vector<8x16xf32> -> vector<8x16xf32>
    "tpu.trace_stop"() : () -> ()
    %cst_9 = arith.constant dense<0xFF800000> : vector<8xf32>
    %14 = vector.multi_reduction <maximumf>, %13, %cst_9 [1] : vector<8x16xf32> to vector<8xf32>
    %15 = vector.shape_cast %14 : vector<8xf32> to vector<8x1xf32>
    %16 = vector.broadcast %15 : vector<8x1xf32> to vector<8x16xf32>
    %17 = arith.subf %13, %16 : vector<8x16xf32>
    %18 = math.exp %17 : vector<8x16xf32>
    %cst_10 = arith.constant dense<0.000000e+00> : vector<8xf32>
    %19 = vector.multi_reduction <add>, %18, %cst_10 [1] : vector<8x16xf32> to vector<8xf32>
    %20 = vector.shape_cast %19 : vector<8xf32> to vector<8x1xf32>
    %21 = tpu.reciprocal %20 {approx = true} : vector<8x1xf32> -> vector<8x1xf32>
    %22 = vector.broadcast %21 : vector<8x1xf32> to vector<8x16xf32>
    %23 = arith.mulf %18, %22 : vector<8x16xf32>
    %24 = arith.truncf %23 : vector<8x16xf32> to vector<8x16xbf16>
    %cst_11 = arith.constant dense<0.000000e+00> : vector<8x8xf32>
    %25 = tpu.matmul %24, %12, %cst_11 {dimension_numbers = #tpu.dot_dimension_numbers<[1], [0], [0], [1], [0, 0, 1, 1], [], []>} : vector<8x16xbf16>, vector<16x8xbf16>, vector<8x8xf32> -> vector<8x8xf32>
    %26 = arith.truncf %25 : vector<8x8xf32> to vector<8x8xbf16>
    %c0_12 = arith.constant 0 : index
    %c0_13 = arith.constant 0 : index
    %c0_14 = arith.constant 0 : index
    %27 = vector.load %arg8[%c0_12, %c0_13, %c0_14] : memref<4x8x32xbf16, #tpu.memory_space<vmem>>, vector<1x8x32xbf16>
    %28 = vector.shape_cast %27 : vector<1x8x32xbf16> to vector<8x32xbf16>
    %cst_15 = arith.constant dense<0.000000e+00> : vector<8x32xf32>
    %29 = tpu.matmul %26, %28, %cst_15 {dimension_numbers = #tpu.dot_dimension_numbers<[1], [0], [0], [1], [0, 0, 1, 1], [], []>} : vector<8x8xbf16>, vector<8x32xbf16>, vector<8x32xf32> -> vector<8x32xf32>
    %30 = arith.addf %5, %29 : vector<8x32xf32>
    %c1 = arith.constant 1 : index
    %31 = arith.index_cast %4 : i32 to index
    %c0_16 = arith.constant 0 : index
    %32 = vector.load %arg11[%c1, %31, %c0_16] : memref<4x16x8xbf16, #tpu.memory_space<vmem>>, vector<1x8x8xbf16>
    %33 = vector.shape_cast %32 : vector<1x8x8xbf16> to vector<8x8xbf16>
    %c1_17 = arith.constant 1 : index
    %c0_18 = arith.constant 0 : index
    %c0_19 = arith.constant 0 : index
    %34 = vector.load %arg12[%c1_17, %c0_18, %c0_19] : memref<4x16x8xbf16, #tpu.memory_space<vmem>>, vector<1x16x8xbf16>
    %35 = vector.shape_cast %34 : vector<1x16x8xbf16> to vector<16x8xbf16>
    %c1_20 = arith.constant 1 : index
    %c0_21 = arith.constant 0 : index
    %c0_22 = arith.constant 0 : index
    %36 = vector.load %arg13[%c1_20, %c0_21, %c0_22] : memref<4x16x8xbf16, #tpu.memory_space<vmem>>, vector<1x16x8xbf16>
    %37 = vector.shape_cast %36 : vector<1x16x8xbf16> to vector<16x8xbf16>
    "tpu.trace_start"() <{level = 10 : i32, message = "qe,ke->qk"}> : () -> ()
    %cst_23 = arith.constant dense<0.000000e+00> : vector<8x16xf32>
    %38 = tpu.matmul %33, %35, %cst_23 {dimension_numbers = #tpu.dot_dimension_numbers<[1], [1], [0], [0], [0, 0, 1, 0], [], []>} : vector<8x8xbf16>, vector<16x8xbf16>, vector<8x16xf32> -> vector<8x16xf32>
    "tpu.trace_stop"() : () -> ()
    %cst_24 = arith.constant dense<0xFF800000> : vector<8xf32>
    %39 = vector.multi_reduction <maximumf>, %38, %cst_24 [1] : vector<8x16xf32> to vector<8xf32>
    %40 = vector.shape_cast %39 : vector<8xf32> to vector<8x1xf32>
    %41 = vector.broadcast %40 : vector<8x1xf32> to vector<8x16xf32>
    %42 = arith.subf %38, %41 : vector<8x16xf32>
    %43 = math.exp %42 : vector<8x16xf32>
    %cst_25 = arith.constant dense<0.000000e+00> : vector<8xf32>
    %44 = vector.multi_reduction <add>, %43, %cst_25 [1] : vector<8x16xf32> to vector<8xf32>
    %45 = vector.shape_cast %44 : vector<8xf32> to vector<8x1xf32>
    %46 = tpu.reciprocal %45 {approx = true} : vector<8x1xf32> -> vector<8x1xf32>
    %47 = vector.broadcast %46 : vector<8x1xf32> to vector<8x16xf32>
    %48 = arith.mulf %43, %47 : vector<8x16xf32>
    %49 = arith.truncf %48 : vector<8x16xf32> to vector<8x16xbf16>
    %cst_26 = arith.constant dense<0.000000e+00> : vector<8x8xf32>
    %50 = tpu.matmul %49, %37, %cst_26 {dimension_numbers = #tpu.dot_dimension_numbers<[1], [0], [0], [1], [0, 0, 1, 1], [], []>} : vector<8x16xbf16>, vector<16x8xbf16>, vector<8x8xf32> -> vector<8x8xf32>
    %51 = arith.truncf %50 : vector<8x8xf32> to vector<8x8xbf16>
    %c1_27 = arith.constant 1 : index
    %c0_28 = arith.constant 0 : index
    %c0_29 = arith.constant 0 : index
    %52 = vector.load %arg8[%c1_27, %c0_28, %c0_29] : memref<4x8x32xbf16, #tpu.memory_space<vmem>>, vector<1x8x32xbf16>
    %53 = vector.shape_cast %52 : vector<1x8x32xbf16> to vector<8x32xbf16>
    %cst_30 = arith.constant dense<0.000000e+00> : vector<8x32xf32>
    %54 = tpu.matmul %51, %53, %cst_30 {dimension_numbers = #tpu.dot_dimension_numbers<[1], [0], [0], [1], [0, 0, 1, 1], [], []>} : vector<8x8xbf16>, vector<8x32xbf16>, vector<8x32xf32> -> vector<8x32xf32>
    %55 = arith.addf %30, %54 : vector<8x32xf32>
    %c2 = arith.constant 2 : index
    %56 = arith.index_cast %4 : i32 to index
    %c0_31 = arith.constant 0 : index
    %57 = vector.load %arg11[%c2, %56, %c0_31] : memref<4x16x8xbf16, #tpu.memory_space<vmem>>, vector<1x8x8xbf16>
    %58 = vector.shape_cast %57 : vector<1x8x8xbf16> to vector<8x8xbf16>
    %c2_32 = arith.constant 2 : index
    %c0_33 = arith.constant 0 : index
    %c0_34 = arith.constant 0 : index
    %59 = vector.load %arg12[%c2_32, %c0_33, %c0_34] : memref<4x16x8xbf16, #tpu.memory_space<vmem>>, vector<1x16x8xbf16>
    %60 = vector.shape_cast %59 : vector<1x16x8xbf16> to vector<16x8xbf16>
    %c2_35 = arith.constant 2 : index
    %c0_36 = arith.constant 0 : index
    %c0_37 = arith.constant 0 : index
    %61 = vector.load %arg13[%c2_35, %c0_36, %c0_37] : memref<4x16x8xbf16, #tpu.memory_space<vmem>>, vector<1x16x8xbf16>
    %62 = vector.shape_cast %61 : vector<1x16x8xbf16> to vector<16x8xbf16>
    "tpu.trace_start"() <{level = 10 : i32, message = "qe,ke->qk"}> : () -> ()
    %cst_38 = arith.constant dense<0.000000e+00> : vector<8x16xf32>
    %63 = tpu.matmul %58, %60, %cst_38 {dimension_numbers = #tpu.dot_dimension_numbers<[1], [1], [0], [0], [0, 0, 1, 0], [], []>} : vector<8x8xbf16>, vector<16x8xbf16>, vector<8x16xf32> -> vector<8x16xf32>
    "tpu.trace_stop"() : () -> ()
    %cst_39 = arith.constant dense<0xFF800000> : vector<8xf32>
    %64 = vector.multi_reduction <maximumf>, %63, %cst_39 [1] : vector<8x16xf32> to vector<8xf32>
    %65 = vector.shape_cast %64 : vector<8xf32> to vector<8x1xf32>
    %66 = vector.broadcast %65 : vector<8x1xf32> to vector<8x16xf32>
    %67 = arith.subf %63, %66 : vector<8x16xf32>
    %68 = math.exp %67 : vector<8x16xf32>
    %cst_40 = arith.constant dense<0.000000e+00> : vector<8xf32>
    %69 = vector.multi_reduction <add>, %68, %cst_40 [1] : vector<8x16xf32> to vector<8xf32>
    %70 = vector.shape_cast %69 : vector<8xf32> to vector<8x1xf32>
    %71 = tpu.reciprocal %70 {approx = true} : vector<8x1xf32> -> vector<8x1xf32>
    %72 = vector.broadcast %71 : vector<8x1xf32> to vector<8x16xf32>
    %73 = arith.mulf %68, %72 : vector<8x16xf32>
    %74 = arith.truncf %73 : vector<8x16xf32> to vector<8x16xbf16>
    %cst_41 = arith.constant dense<0.000000e+00> : vector<8x8xf32>
    %75 = tpu.matmul %74, %62, %cst_41 {dimension_numbers = #tpu.dot_dimension_numbers<[1], [0], [0], [1], [0, 0, 1, 1], [], []>} : vector<8x16xbf16>, vector<16x8xbf16>, vector<8x8xf32> -> vector<8x8xf32>
    %76 = arith.truncf %75 : vector<8x8xf32> to vector<8x8xbf16>
    %c2_42 = arith.constant 2 : index
    %c0_43 = arith.constant 0 : index
    %c0_44 = arith.constant 0 : index
    %77 = vector.load %arg8[%c2_42, %c0_43, %c0_44] : memref<4x8x32xbf16, #tpu.memory_space<vmem>>, vector<1x8x32xbf16>
    %78 = vector.shape_cast %77 : vector<1x8x32xbf16> to vector<8x32xbf16>
    %cst_45 = arith.constant dense<0.000000e+00> : vector<8x32xf32>
    %79 = tpu.matmul %76, %78, %cst_45 {dimension_numbers = #tpu.dot_dimension_numbers<[1], [0], [0], [1], [0, 0, 1, 1], [], []>} : vector<8x8xbf16>, vector<8x32xbf16>, vector<8x32xf32> -> vector<8x32xf32>
    %80 = arith.addf %55, %79 : vector<8x32xf32>
    %c3 = arith.constant 3 : index
    %81 = arith.index_cast %4 : i32 to index
    %c0_46 = arith.constant 0 : index
    %82 = vector.load %arg11[%c3, %81, %c0_46] : memref<4x16x8xbf16, #tpu.memory_space<vmem>>, vector<1x8x8xbf16>
    %83 = vector.shape_cast %82 : vector<1x8x8xbf16> to vector<8x8xbf16>
    %c3_47 = arith.constant 3 : index
    %c0_48 = arith.constant 0 : index
    %c0_49 = arith.constant 0 : index
    %84 = vector.load %arg12[%c3_47, %c0_48, %c0_49] : memref<4x16x8xbf16, #tpu.memory_space<vmem>>, vector<1x16x8xbf16>
    %85 = vector.shape_cast %84 : vector<1x16x8xbf16> to vector<16x8xbf16>
    %c3_50 = arith.constant 3 : index
    %c0_51 = arith.constant 0 : index
    %c0_52 = arith.constant 0 : index
    %86 = vector.load %arg13[%c3_50, %c0_51, %c0_52] : memref<4x16x8xbf16, #tpu.memory_space<vmem>>, vector<1x16x8xbf16>
    %87 = vector.shape_cast %86 : vector<1x16x8xbf16> to vector<16x8xbf16>
    "tpu.trace_start"() <{level = 10 : i32, message = "qe,ke->qk"}> : () -> ()
    %cst_53 = arith.constant dense<0.000000e+00> : vector<8x16xf32>
    %88 = tpu.matmul %83, %85, %cst_53 {dimension_numbers = #tpu.dot_dimension_numbers<[1], [1], [0], [0], [0, 0, 1, 0], [], []>} : vector<8x8xbf16>, vector<16x8xbf16>, vector<8x16xf32> -> vector<8x16xf32>
    "tpu.trace_stop"() : () -> ()
    %cst_54 = arith.constant dense<0xFF800000> : vector<8xf32>
    %89 = vector.multi_reduction <maximumf>, %88, %cst_54 [1] : vector<8x16xf32> to vector<8xf32>
    %90 = vector.shape_cast %89 : vector<8xf32> to vector<8x1xf32>
    %91 = vector.broadcast %90 : vector<8x1xf32> to vector<8x16xf32>
    %92 = arith.subf %88, %91 : vector<8x16xf32>
    %93 = math.exp %92 : vector<8x16xf32>
    %cst_55 = arith.constant dense<0.000000e+00> : vector<8xf32>
    %94 = vector.multi_reduction <add>, %93, %cst_55 [1] : vector<8x16xf32> to vector<8xf32>
    %95 = vector.shape_cast %94 : vector<8xf32> to vector<8x1xf32>
    %96 = tpu.reciprocal %95 {approx = true} : vector<8x1xf32> -> vector<8x1xf32>
    %97 = vector.broadcast %96 : vector<8x1xf32> to vector<8x16xf32>
    %98 = arith.mulf %93, %97 : vector<8x16xf32>
    %99 = arith.truncf %98 : vector<8x16xf32> to vector<8x16xbf16>
    %cst_56 = arith.constant dense<0.000000e+00> : vector<8x8xf32>
    %100 = tpu.matmul %99, %87, %cst_56 {dimension_numbers = #tpu.dot_dimension_numbers<[1], [0], [0], [1], [0, 0, 1, 1], [], []>} : vector<8x16xbf16>, vector<16x8xbf16>, vector<8x8xf32> -> vector<8x8xf32>
    %101 = arith.truncf %100 : vector<8x8xf32> to vector<8x8xbf16>
    %c3_57 = arith.constant 3 : index
    %c0_58 = arith.constant 0 : index
    %c0_59 = arith.constant 0 : index
    %102 = vector.load %arg8[%c3_57, %c0_58, %c0_59] : memref<4x8x32xbf16, #tpu.memory_space<vmem>>, vector<1x8x32xbf16>
    %103 = vector.shape_cast %102 : vector<1x8x32xbf16> to vector<8x32xbf16>
    %cst_60 = arith.constant dense<0.000000e+00> : vector<8x32xf32>
    %104 = tpu.matmul %101, %103, %cst_60 {dimension_numbers = #tpu.dot_dimension_numbers<[1], [0], [0], [1], [0, 0, 1, 1], [], []>} : vector<8x8xbf16>, vector<8x32xbf16>, vector<8x32xf32> -> vector<8x32xf32>
    %105 = arith.addf %80, %104 : vector<8x32xf32>
    %c0_61 = arith.constant 0 : index
    %106 = arith.index_cast %4 : i32 to index
    %c0_62 = arith.constant 0 : index
    %107 = vector.load %arg2[%c0_61, %106, %c0_62] : memref<1x16x32xf32, #tpu.memory_space<vmem>>, vector<1x8x32xf32>
    %108 = vector.shape_cast %107 : vector<1x8x32xf32> to vector<8x32xf32>
    %c0_63 = arith.constant 0 : index
    %c0_64 = arith.constant 0 : index
    %109 = vector.load %arg9[%c0_63, %c0_64] : memref<1x32xf32, #tpu.memory_space<vmem>>, vector<1x32xf32>
    %110 = vector.broadcast %109 : vector<1x32xf32> to vector<8x32xf32>
    %111 = arith.addf %105, %110 : vector<8x32xf32>
    %112 = arith.addf %111, %108 : vector<8x32xf32>
    %c0_65 = arith.constant 0 : index
    %c0_66 = arith.constant 0 : index
    %c0_67 = arith.constant 0 : index
    %113 = vector.load %arg10[%c0_65, %c0_66, %c0_67] : memref<1x8x32xf32, #tpu.memory_space<vmem>>, vector<1x8x32xf32>
    %114 = vector.shape_cast %113 : vector<1x8x32xf32> to vector<8x32xf32>
    %115 = vector.shape_cast %112 : vector<8x32xf32> to vector<1x8x32xf32>
    tpu.vector_store %arg10[%c0_65, %c0_66, %c0_67], %115 {strides = array<i32>} : memref<1x8x32xf32, #tpu.memory_space<vmem>>, vector<1x8x32xf32>,
    return
  }
  func.func @transform_0(%arg0: i32, %arg1: i32) -> (i32, i32, i32) {
    %c0_i32 = arith.constant 0 : i32
    %c0_i32_0 = arith.constant 0 : i32
    %c0_i32_1 = arith.constant 0 : i32
    return %arg0, %c0_i32, %c0_i32_0 : i32, i32, i32
  }
  func.func @transform_1(%arg0: i32, %arg1: i32) -> (i32, i32) {
    %c0_i32 = arith.constant 0 : i32
    %c0_i32_0 = arith.constant 0 : i32
    %c0_i32_1 = arith.constant 0 : i32
    return %c0_i32, %c0_i32_0 : i32, i32
  }
  func.func @transform_2(%arg0: i32, %arg1: i32) -> (i32, i32) {
    %c0_i32 = arith.constant 0 : i32
    %c0_i32_0 = arith.constant 0 : i32
    %c0_i32_1 = arith.constant 0 : i32
    return %c0_i32, %c0_i32_0 : i32, i32
  }
  func.func @transform_3(%arg0: i32, %arg1: i32) -> (i32, i32) {
    %c0_i32 = arith.constant 0 : i32
    %c0_i32_0 = arith.constant 0 : i32
    %c0_i32_1 = arith.constant 0 : i32
    return %c0_i32, %c0_i32_0 : i32, i32
  }
  func.func @transform_4(%arg0: i32, %arg1: i32) -> (i32, i32) {
    %c0_i32 = arith.constant 0 : i32
    %c0_i32_0 = arith.constant 0 : i32
    %c0_i32_1 = arith.constant 0 : i32
    return %c0_i32, %c0_i32_0 : i32, i32
  }
  func.func @transform_5(%arg0: i32, %arg1: i32) -> (i32, i32) {
    %c0_i32 = arith.constant 0 : i32
    %c0_i32_0 = arith.constant 0 : i32
    %c0_i32_1 = arith.constant 0 : i32
    return %c0_i32, %c0_i32_0 : i32, i32
  }
  func.func @transform_6(%arg0: i32, %arg1: i32) -> (i32, i32, i32) {
    %c0_i32 = arith.constant 0 : i32
    %c0_i32_0 = arith.constant 0 : i32
    %c0_i32_1 = arith.constant 0 : i32
    %c0_i32_2 = arith.constant 0 : i32
    return %c0_i32, %c0_i32_0, %c0_i32_1 : i32, i32, i32
  }
  func.func @transform_7(%arg0: i32, %arg1: i32) -> (i32, i32) {
    %c0_i32 = arith.constant 0 : i32
    %c0_i32_0 = arith.constant 0 : i32
    %c0_i32_1 = arith.constant 0 : i32
    return %c0_i32, %c0_i32_0 : i32, i32
  }
  func.func @transform_8(%arg0: i32, %arg1: i32) -> (i32, i32, i32) {
    %c0_i32 = arith.constant 0 : i32
    %c0_i32_0 = arith.constant 0 : i32
    return %arg0, %arg1, %c0_i32 : i32, i32, i32
  }
}

</mosaic_0001>

<bundles_post_ra>
// kernel: tpu_custom_call.1
= control target key start
LH: loop header
LB: loop body
LE: loop exit
PB: predicated region body
PF: predicated region fallthrough
CT: control target
= control target key end

     0   :  { %s2239_s0 = inlined_call_operand.hbm [shape: f32[2,16,32], index: 0, kind: input, shape index: {}]   ;;  %s2240_s1 = inlined_call_operand.hbm [shape: f32[1,32], index: 1, kind: input, shape index: {}]   ;;  %s2241_s2 = inlined_call_operand.vmem [shape: f32[1,32], index: 2, kind: input, shape index: {}]   ;;  %s2242_s3 = inlined_call_operand.hbm [shape: bf16[32,32], index: 3, kind: input, shape index: {}]   ;;  %s2243_s4 = inlined_call_operand.hbm [shape: bf16[32,32], index: 4, kind: input, shape index: {}]   ;;  %s2244_s5 = inlined_call_operand.hbm [shape: bf16[32,32], index: 5, kind: input, shape index: {}]   ;;  %s2245_s6 = inlined_call_operand.hbm [shape: bf16[4,8,32], index: 6, kind: input, shape index: {}]   ;;  %s2246_s7 = inlined_call_operand.vmem [shape: f32[1,32], index: 7, kind: input, shape index: {}]   ;;  %s2247_s8 = inlined_call_operand.hbm [shape: f32[2,16,32], index: 8, kind: output, shape index: {}]  }
   0x1   :  { %2253 = sst [smem:[#allocation26_spill]] %s2240_s1 }
   0x2   :  { %2254 = sst [smem:[#allocation27_spill]] %s2241_s2 }
   0x3   :  { %2255 = sst [smem:[#allocation28_spill]] %s2242_s3 }
   0x4   :  { %2256 = sst [smem:[#allocation29_spill]] %s2243_s4 }
   0x5   :  { %2257 = sst [smem:[#allocation30_spill]] %s2244_s5 }
   0x6   :  { %2258 = sst [smem:[#allocation31_spill]] %s2245_s6 }
   0x7   :  { %2259 = sst [smem:[#allocation32_spill]] %s2246_s7 }
   0x8   :  { %2260 = sst [smem:[#allocation33_spill]] %s2247_s8 }
   0x9   :  { %13 = vsyncpa [#allocation6], 0 }
   0xa   :  { %15 = vsyncpa [#allocation6 + $0x1], 0 }
   0xb   :  { %16 = vsyncpa [#allocation9], 0 }
   0xc   :  { %17 = vsyncpa [#allocation12], 0 }
   0xd   :  { %18 = vsyncpa [#allocation15], 0 }
   0xe   :  { %19 = vsyncpa [#allocation7], 0 }
   0xf   :  { %21 = vsyncpa [#allocation7 + $0x1], 0  ;;  %s1902_s27 = smov 0   ;;  %s1904_s28 = smov 0  }
  0x10   :  { %s1906_s29 = smov 0   ;;  %s1908_s30 = smov 0  }
  0x11   :  { %s1910_s9 = smov 0   ;;  %s1912_s10 = smov 0  }
  0x12   :  { %s1914_s11 = smov 0   ;;  %s1916_s12 = smov 0  }
  0x13   :  { %s1918_s13 = smov 0   ;;  %s1920_s14 = smov 0  }
  0x14   :  { %s1922_s15 = smov 0  }
  0x15 LB: > { %2261 = sst [smem:[#allocation22_spill]] %s1826_s11  ;;  %s1222_s16 = sadd.s32 4294967295, %s1842_s15   ;;  %s1842_s15 = sphi %s1922_s15, %s27_s15   ;;  %s1838_s14 = sphi %s1920_s14, %s2296_s14   ;;  %s1834_s13 = sphi %s1918_s13, %s2295_s13   ;;  %s1830_s12 = sphi %s1916_s12, %s2294_s12   ;;  %s1826_s11 = sphi %s1914_s11, %s2293_s11   ;;  %s1822_s10 = sphi %s1912_s10, %s2292_s10   ;;  %s1818_s9 = sphi %s1910_s9, %s2291_s9   ;;  %s1814_s30 = sphi %s1908_s30, %s2290_s30   ;;  %s1810_s29 = sphi %s1906_s29, %s2289_s29   ;;  %s1806_s28 = sphi %s1904_s28, %s2288_s28   ;;  %s1802_s27 = sphi %s1902_s27, %s2287_s27  }
  0x16   : > { %2262 = sst [smem:[#allocation23_spill]] %s1830_s12  ;;  %p1224_p0 = scmp.ge.s32.totalorder %s1842_s15, 1 }
  0x17   : > { %p1959_p1 = scmp.eq.s32.totalorder %s1222_s16, 0  ;;  %p1963_p2 = scmp.eq.s32.totalorder %s1222_s16, 3 }
  0x18   : > { %p245_p3 = scmp.lt.s32.totalorder %s1842_s15, 5  ;;  %s2265_s1 = sld [smem:[#allocation26_spill]] }
  0x19   : > { %s1844_s23 = smov [#allocation8]   ;;  %s2268_s4 = sld [smem:[#allocation29_spill]] }
  0x1a   : > { %p1971_p4 = pnand %p1224_p0, %p245_p3  ;;  %s259_s24 = sshll.u32 %s1844_s23, 4  ;;  %s260_s24 = int_to_ptr.vmem [resolvable:$true] %s259_s24 }
  0x1b   : > { %s1845_s20 = smov [#allocation11]   ;;  %s2269_s3 = sld [smem:[#allocation28_spill]] }
  0x1c   : > { %p1366_p5 = pneg %p1971_p4  ;;  %s1846_s12 = smov 64  }
  0x1d   : > { %s1847_s2 = smov 4   ;;  %s1848_s26 = smov [#allocation10]  }
  0x1e   : > { %s257_s21 = sshll.u32 %s2265_s1, 4  ;;  %p1979_p6 = pnand %p1366_p5, %p1959_p1  ;;  %s258_s21 = int_to_ptr.hbm [resolvable:$true] %s257_s21 }
  0x1f   : > { %s285_s19 = sshll.u32 %s2268_s4, 4  ;;  %s287_s1 = sshll.u32 %s1845_s20, 4  ;;  %s286_s19 = int_to_ptr.hbm [resolvable:$true] %s285_s19  ;;  %s288_s1 = int_to_ptr.vmem [resolvable:$true] %s287_s1 }
  0x20   : > { %1369 = dma.hbm_to_vmem [thread:$0]  (!%p1979_p6), %s258_s21, 16, %s260_s24, [#allocation9]  }
  0x21   : > { %s271_s7 = sshll.u32 %s2269_s3, 4  ;;  %s273_s16 = sshll.u32 %s1848_s26, 4  ;;  %s272_s7 = int_to_ptr.hbm [resolvable:$true] %s271_s7  ;;  %s274_s16 = int_to_ptr.vmem [resolvable:$true] %s273_s16 }
  0x22   : > { %1375 = dma.hbm_to_vmem [thread:$0]  (!%p1979_p6), %s286_s19, 256, %s288_s1, [#allocation12], %s1846_s12, %s1846_s12, %s1847_s2  }
  0x23   : > { %s2270_s5 = sld [smem:[#allocation30_spill]]  ;;  %s1849_s19 = smov [#allocation13]  }
  0x24   : > { %1372 = dma.hbm_to_vmem [thread:$0]  (!%p1979_p6), %s272_s7, 256, %s274_s16, [#allocation9], %s1846_s12, %s1846_s12, %s1847_s2  }
  0x25   : > { %s2271_s6 = sld [smem:[#allocation31_spill]]  ;;  %s301_s20 = sshll.u32 %s1849_s19, 4  ;;  %s302_s20 = int_to_ptr.vmem [resolvable:$true] %s301_s20 }
  0x26   : > { %s1850_s4 = smov [#allocation14]   ;;  %s1223_s7 = sadd.s32 4294967294, %s1842_s15  }
  0x27   : > { %s315_s11 = sshll.u32 %s1850_s4, 4  ;;  %s36_s23 = sadd.s32 1, %s1834_s13  ;;  %s316_s11 = int_to_ptr.vmem [resolvable:$true] %s315_s11 }
  0x28   : > { %p37_p7 = scmp.ge.s32.totalorder %s36_s23, 2  ;;  %s39_s26 = sadd.s32 1, %s1838_s14 }
  0x29   : > { %s299_s21 = sshll.u32 %s2270_s5, 4  ;;  %s46_s16 = sadd.s32 1, %s1822_s10  ;;  %s300_s21 = int_to_ptr.hbm [resolvable:$true] %s299_s21 }
  0x2a   : > { %1378 = dma.hbm_to_vmem [thread:$0]  (!%p1979_p6), %s300_s21, 256, %s302_s20, [#allocation12], %s1846_s12, %s1846_s12, %s1847_s2  }
  0x2b   : > { %s313_s1 = sshll.u32 %s2271_s6, 4  ;;  %p53_p8 = scmp.ne.s32.totalorder %s1822_s10, %s1818_s9  ;;  %s314_s1 = int_to_ptr.hbm [resolvable:$true] %s313_s1 }
  0x2c   : > { %1381 = dma.hbm_to_vmem [thread:$0]  (!%p1979_p6), %s314_s1, 256, %s316_s11, [#allocation15], %s1846_s12, %s1846_s12, %s1847_s2  }
  0x2d   : > { %s2298_s23 = smov (%p37_p7, %s36_s23), 0  ;;  %s2300_s26 = smov (!%p37_p7, %s39_s26), %s1838_s14 }
  0x2e   : > { %2272 = sst [smem:[#allocation24_spill]] %s2298_s23  ;;  %p54_p9 = scmp.eq.s32.totalorder %s1842_s15, 0 }
  0x2f   : > { %p59_p10 = scmp.ne.s32.totalorder %s1818_s9, %s1814_s30  ;;  %p41_p11 = scmp.ge.s32.totalorder %s2300_s26, 2 }
  0x30   : > { %s217_s2 = ssub.s32 %s1834_s13, %s2298_s23  ;;  %p2019_p12 = por %p54_p9, %p53_p8 }
  0x31   : > { %p2025_p13 = por %p1959_p1, %p59_p10  ;;  %s2302_s26 = smov (%p41_p11, %s2300_s26), 0 }
  0x32   : > { %2275 = sst [smem:[#allocation25_spill]] %s2302_s26  ;;  %s221_s21 = sadd.s32 1, %s1810_s29 }
  0x33   : > { %p231_p0 = scmp.ne.s32.totalorder %s1810_s29, %s1806_s28  ;;  %s43_s30 = ssub.s32 %s1838_s14, %s2302_s26 }
  0x34   : > { %p237_p3 = scmp.ne.s32.totalorder %s1806_s28, %s1802_s27  ;;  %p44_p5 = scmp.eq.s32.totalorder %s43_s30, 0 }
  0x35   : > { %s218_s8 = sor.u32 %s217_s2, %s43_s30  ;;  %p2040_p7 = por %p1963_p2, %p231_p0 }
  0x36   : > { %p219_p6 = scmp.eq.s32.totalorder %s218_s8, 0  ;;  %p238_p8 = scmp.eq.s32.totalorder %s1223_s7, 3 }
  0x37   : > { %s2045_s1 = scalar_select %p44_p5, %s1822_s10, %s46_s16  }
  0x38   : > { %s2048_s19 = scalar_select %p219_p6, %s1810_s29, %s221_s21  }
  0x39   : > { %p1395_p9 = scmp.lt.s32.totalorder %s1842_s15, 4  ;;  %s332_s20 = sand.u32 1, %s1822_s10  }
  0x3a   : > { %s1327_s4 = sshll.u32 %s1838_s14, 4  ;;  %p2053_p10 = por %p238_p8, %p237_p3 }
  0x3b   : > { %s1231_s2 = sshll.u32 %s332_s20, 4  ;;  %s341_s8 = scalar_lea.hbm %s2239_s0, %s1327_s4 }
  0x3c   : > { %s342_s3 = sshll.u32 %s341_s8, 4  ;;  %s336_s5 = scalar_lea.vmem [#allocation5], %s1231_s2  ;;  %s343_s3 = int_to_ptr.hbm [resolvable:$true] %s342_s3 }
  0x3d   : > { %s344_s16 = sshll.u32 %s336_s5, 4  ;;  %p1383_p2 = pnand %p1395_p9, %p2019_p12  ;;  %s345_s16 = int_to_ptr.vmem [resolvable:$true] %s344_s16 }
  0x3e   : > { %s333_s7 = scalar_lea.sflag [#allocation6], %s332_s20  ;;  %s1851_s21 = smov 128  }
  0x3f   : > { %s1852_s6 = smov 8   ;;  %356 = sbr.rel (%p1971_p4) target bundleno = 1847 (0x737), region = 52 }
  0x40   : > { %1385 = dma.hbm_to_vmem [thread:$0]  (!%p1383_p2), %s343_s3, 256, %s345_s16, %s333_s7, %s1851_s21, %s1851_s21, %s1852_s6  }
  0x41   : > { %s358_s26 = sand.u32 (!%p1971_p4), 1, %s1818_s9  }
  0x42   : > { %s1235_s23 = sshll.u32 (!%p1971_p4), %s358_s26, 4  ;;  %s359_s30 = scalar_lea.sflag (!%p1971_p4), [#allocation6], %s358_s26 }
  0x43   : > { %s2065_s4 = scalar_lea.vmem (!%p1971_p4), [#allocation5], %s1235_s23 }
  0x44   : > { %1781 = dma.done.wait (%p2025_p13), %s359_s30, 256  }
  0x45   : > { %1783 = vsyncadd (%p2025_p13), %s359_s30, 4294967040 }
  0x46   : > { %1785 = dma.done.wait (%p1959_p1), [#allocation9], 272  }
  0x47   : > { %1787 = vsyncadd (%p1959_p1), [#allocation9], 4294967024 }
  0x48   : > { %1789 = dma.done.wait (%p1959_p1), [#allocation12], 512  }
  0x49   : > { %1791 = vsyncadd (%p1959_p1), [#allocation12], 4294966784 }
  0x4a   : > { %1793 = dma.done.wait (%p1959_p1), [#allocation15], 256  }
  0x4b   : > { %1795 = vsyncadd (%p1959_p1), [#allocation15], 4294967040  ;;  %s2252_s3 = sand.u32 1, %s1806_s28   ;;  %s2278_s22 = sld [smem:[#allocation22_spill]] }
  0x4c   : > { %s2086_s5 = sshll.u32 %s2252_s3, 3 }
  0x4d   : > { %s420_s6 = scalar_lea.vmem [#allocation16], %s2086_s5 }
  0x51   : > { %p1242_p4 = scmp.ne.s32.totalorder %s2278_s22, 0 }
  0x52   : > { %s2279_s26 = sld [smem:[#allocation27_spill]] (!%p1242_p4)  ;;  %s1854_s12 = smov (!%p1242_p4), 120  }
  0x53   : > { %425 = sbr.rel (%p1242_p4) target bundleno = 652 (0x28c), region = 80  ;;  %s1855_s25 = smov (!%p1242_p4), 104  }
  0x54   : > { %s1856_s20 = smov (!%p1242_p4), 112  }
  0x58   : > { %v426_v0 = vld [vmem:[%s2065_s4] sm:$0xff]  ;;  %vm430_vm0 = vcmask 261120   ;;  %v427_v2 = vld [vmem:[%s2065_s4 + $0x8] sm:$0xff]  ;;  %v1853_v4 = vmov 32.0   ;;  %vm592_vm8 = vcmask 60416  }
  0x59   : > { %v431_v1 = vsel %vm430_vm0, %v426_v0, 0.0  ;;  %v434_v3 = vsel %vm430_vm0, %v427_v2, 0.0  ;;  %1505 = vrcp.f32 %v1853_v4  ;;  %v1329_v21 = vld [vmem:[#allocation10 + $0x8] sm:$0xff]  ;;  %v1331_v22 = vld [vmem:[#allocation11 + $0x8] sm:$0xff]  ;;  %v1328_v25 = vld [vmem:[#allocation10] sm:$0xff] }
  0x5a   : > { %432 = vadd.xlane.f32.xlu0 %v431_v1  ;;  %v1333_v23 = vld [vmem:[#allocation13 + $0x8] sm:$0xff]  ;;  %518 = vmatpush.bf16.msra.mxu0 %v1329_v21  ;;  %v1330_v26 = vld [vmem:[#allocation11] sm:$0xff]  ;;  %v1332_v28 = vld [vmem:[#allocation13] sm:$0xff] }
  0x5b   : > { %550 = vmatpush.bf16.msra.mxu1 %v1331_v22  ;;  %582 = vmatpush.bf16.msra.mxu2 %v1333_v23  ;;  %v1503_v46 = vld [vmem:[#allocation8] ss:$0 sm:$0xff] }
  0x5c   : > { %v1504_v51 = vld [vmem:[%s2279_s26] ss:$0 sm:$0xff] }
  0x5e   : > { %519 = vmatpush.bf16.msra.mxu0 %v1328_v25 }
  0x5f   : > { %v1506_v5 = vpop.eup %1505  ;;  %551 = vmatpush.bf16.msra.mxu1 %v1330_v26  ;;  %583 = vmatpush.bf16.msra.mxu2 %v1332_v28 }
  0x60   : > { %v438_v6 = vmul.f32 32.0, %v1506_v5  ;;  %vm442_vm1 = vweird.f32 %v1506_v5 }
  0x62   : > { %435 = vadd.xlane.f32.xlu0 %v434_v3  ;;  %v439_v7 = vsub.f32 1.0, %v438_v6 }
  0x64   : > { %v440_v8 = vmul.f32 %v1506_v5, %v439_v7 }
  0x66   : > { %v441_v9 = vadd.f32 %v1506_v5, %v440_v8 }
  0x68   : > { %v443_v10 = vsel %vm442_vm1, %v1506_v5, %v441_v9 }
  0xcd   : > { %v433_v11 = vpop.xlane.xlu0 %432 }
  0xce   : > { %v444_v12 = vmul.f32 %v443_v10, %v433_v11 }
  0xd0   : > { %v446_v13 = vsub.f32 %v426_v0, %v444_v12 }
  0xd2   : > { %v448_v14 = vmul.f32 %v446_v13, %v446_v13 }
  0xd4   : > { %v450_v15 = vsel %vm430_vm0, %v448_v14, 0.0 }
  0xd5   : > { %451 = vadd.xlane.f32.xlu1 %v450_v15  ;;  %v436_v16 = vpop.xlane.xlu0 %435 }
  0xd6   : > { %v445_v17 = vmul.f32 %v443_v10, %v436_v16 }
  0xd8   : > { %v447_v18 = vsub.f32 %v427_v2, %v445_v17 }
  0xda   : > { %v449_v19 = vmul.f32 %v447_v18, %v447_v18 }
  0xdc   : > { %v453_v20 = vsel %vm430_vm0, %v449_v19, 0.0 }
  0xdd   : > { %454 = vadd.xlane.f32.xlu1 %v453_v20 }
 0x148   : > { %v452_v24 = vpop.xlane.xlu1 %451 }
 0x149   : > { %v456_v27 = vmul.f32 %v452_v24, %v443_v10 }
 0x14b   : > { %v458_v29 = vadd.f32 1e-05, %v456_v27 }
 0x14d   : > { %1507 = vrsqrt.f32 %v458_v29  ;;  %vm466_vm3 = vweird.f32 %v458_v29 }
 0x150   : > { %v455_v30 = vpop.xlane.xlu1 %454 }
 0x151   : > { %v457_v31 = vmul.f32 %v455_v30, %v443_v10 }
 0x153   : > { %v1508_v32 = vpop.eup %1507  ;;  %v459_v33 = vadd.f32 1e-05, %v457_v31 }
 0x154   : > { %v461_v34 = vmul.f32 %v1508_v32, %v458_v29  ;;  %vm467_vm2 = vweird.f32 %v1508_v32 }
 0x155   : > { %1509 = vrsqrt.f32 %v459_v33  ;;  %vm468_vm4 = vmor %vm466_vm3, %vm467_vm2  ;;  %vm476_vm6 = vweird.f32 %v459_v33 }
 0x156   : > { %v462_v35 = vmul.f32 %v1508_v32, %v461_v34 }
 0x158   : > { %v463_v36 = vmul.f32 0.5, %v462_v35 }
 0x15a   : > { %v464_v37 = vsub.f32 1.5, %v463_v36 }
 0x15b   : > { %v1510_v38 = vpop.eup %1509 }
 0x15c   : > { %v465_v39 = vmul.f32 %v1508_v32, %v464_v37  ;;  %v471_v40 = vmul.f32 %v1510_v38, %v459_v33  ;;  %vm477_vm5 = vweird.f32 %v1510_v38 }
 0x15d   : > { %vm478_vm7 = vmor %vm476_vm6, %vm477_vm5 }
 0x15e   : > { %v472_v41 = vmul.f32 %v1510_v38, %v471_v40  ;;  %v469_v42 = vsel %vm468_vm4, %v1508_v32, %v465_v39 }
 0x15f   : > { %v480_v45 = vmul.f32 %v469_v42, %v446_v13 }
 0x160   : > { %v473_v43 = vmul.f32 0.5, %v472_v41 }
 0x161   : > { %v485_v50 = vmul.f32 %v1503_v46, %v480_v45 }
 0x162   : > { %v474_v44 = vsub.f32 1.5, %v473_v43 }
 0x163   : > { %v490_v53 = vadd.f32 %v1504_v51, %v485_v50 }
 0x164   : > { %v475_v47 = vmul.f32 %v1510_v38, %v474_v44 }
 0x166   : > { %v479_v48 = vsel %vm478_vm7, %v1510_v38, %v475_v47 }
 0x167   : > { %v481_v49 = vmul.f32 %v479_v48, %v447_v18 }
 0x169   : > { %v486_v52 = vmul.f32 %v1503_v46, %v481_v49 }
 0x16b   : > { %v491_v54 = vadd.f32 %v1504_v51, %v486_v52 }
 0x16d   : > { %v492_v55 = vpack.c.bf16 %v491_v54, %v490_v53 }
 0x16f   : > { %1251 = vmatmul.msk.bf16.vlgmr.msra.gmra.mxu0 %vm430_vm0, %v492_v55  ;;  %1260 = vmatmul.msk.bf16.vlgmr.msra.gmra.mxu1 %vm430_vm0, %v492_v55 }
 0x170   : > { %1269 = vmatmul.msk.bf16.vlgmr.msra.gmra.mxu2 %vm430_vm0, %v492_v55 }
 0x1ec   : > { %v521_v56 = vpop.f32.mrf.mxu0  ;;  %v553_v57 = vpop.f32.mrf.mxu1 }
 0x1ed   : > { %v526_v58 = vpack.c.bf16 %v521_v56, %v521_v56  ;;  %v558_v59 = vpack.c.bf16 %v553_v57, %v553_v57 }
 0x1ef   : > { %593 = vst.msk [vmem:[#allocation2] sm:$0xf] %vm592_vm8, %v526_v58  ;;  %612 = vrot.lane.b32.xlu0 %v558_v59, %s1854_s12  ;;  %659 = vrot.lane.b32.xlu1 %v526_v58, %s1855_s25 }
 0x1f0   : > { %595 = vst.msk [vmem:[#allocation3] sm:$0xf] %vm592_vm8, %v558_v59  ;;  %601 = vrot.lane.b32.xlu2 %v526_v58, %s1854_s12 }
 0x1f3   : > { %v585_v60 = vpop.f32.mrf.mxu2 }
 0x1f4   : > { %v590_v61 = vpack.c.bf16 %v585_v60, %v585_v60  ;;  %v523_v62 = vpop.f32.mrf.mxu0  ;;  %v555_v63 = vpop.f32.mrf.mxu1 }
 0x1f5   : > { %v527_v0 = vpack.c.bf16 %v523_v62, %v523_v62  ;;  %v559_v1 = vpack.c.bf16 %v555_v63, %v555_v63 }
 0x1f6   : > { %597 = vst.msk [vmem:[#allocation4] sm:$0xf] %vm592_vm8, %v590_v61 }
 0x1f7   : > { %594 = vst.msk [vmem:[#allocation2 + $0x4] sm:$0xf] %vm592_vm8, %v527_v0  ;;  %650 = vrot.lane.b32.xlu0 %v590_v61, %s1856_s20  ;;  %614 = vrot.lane.b32.xlu1 %v559_v1, %s1854_s12 }
 0x1f8   : > { %596 = vst.msk [vmem:[#allocation3 + $0x4] sm:$0xf] %vm592_vm8, %v559_v1  ;;  %632 = vrot.lane.b32.xlu2 %v526_v58, %s1856_s20 }
 0x1fb   : > { %v587_v2 = vpop.f32.mrf.mxu2 }
 0x1fc   : > { %v591_v3 = vpack.c.bf16 %v587_v2, %v587_v2 }
 0x1fe   : > { %598 = vst.msk [vmem:[#allocation4 + $0x4] sm:$0xf] %vm592_vm8, %v591_v3 }
 0x1ff   : > { %643 = vrot.lane.b32.xlu1 %v559_v1, %s1856_s20  ;;  %634 = vrot.lane.b32.xlu0 %v527_v0, %s1856_s20 }
 0x200   : > { %641 = vrot.lane.b32.xlu2 %v558_v59, %s1856_s20 }
 0x207   : > { %670 = vrot.lane.b32.xlu1 %v559_v1, %s1855_s25  ;;  %661 = vrot.lane.b32.xlu0 %v527_v0, %s1855_s25 }
 0x208   : > { %668 = vrot.lane.b32.xlu2 %v558_v59, %s1855_s25 }
 0x20f   : > { %677 = vrot.lane.b32.xlu0 %v590_v61, %s1855_s25 }
 0x210   : > { %623 = vrot.lane.b32.xlu2 %v590_v61, %s1854_s12 }
 0x218   : > { %603 = vrot.lane.b32.xlu2 %v527_v0, %s1854_s12 }
 0x220   : > { %625 = vrot.lane.b32.xlu2 %v591_v3, %s1854_s12 }
 0x228   : > { %652 = vrot.lane.b32.xlu2 %v591_v3, %s1856_s20 }
 0x230   : > { %679 = vrot.lane.b32.xlu2 %v591_v3, %s1855_s25 }
 0x24a   : > { %v602_v4 = vpop.permute.xlu2 %601 }
 0x24b   : > { %608 = vst.msk [vmem:[#allocation2 + $0x8] sm:$0xf] %vm592_vm8, %v602_v4 }
 0x252   : > { %v633_v5 = vpop.permute.xlu2 %632 }
 0x253   : > { %639 = vst.msk [vmem:[#allocation2 + $0x10] sm:$0xf] %vm592_vm8, %v633_v5 }
 0x25a   : > { %v642_v6 = vpop.permute.xlu2 %641 }
 0x25b   : > { %648 = vst.msk [vmem:[#allocation3 + $0x10] sm:$0xf] %vm592_vm8, %v642_v6 }
 0x261   : > { %v613_v7 = vpop.permute.xlu0 %612  ;;  %v660_v8 = vpop.permute.xlu1 %659 }
 0x262   : > { %619 = vst.msk [vmem:[#allocation3 + $0x8] sm:$0xf] %vm592_vm8, %v613_v7  ;;  %v669_v9 = vpop.permute.xlu2 %668 }
 0x263   : > { %666 = vst.msk [vmem:[#allocation2 + $0x18] sm:$0xf] %vm592_vm8, %v660_v8 }
 0x264   : > { %675 = vst.msk [vmem:[#allocation3 + $0x18] sm:$0xf] %vm592_vm8, %v669_v9 }
 0x269   : > { %v651_v10 = vpop.permute.xlu0 %650  ;;  %v615_v11 = vpop.permute.xlu1 %614 }
 0x26a   : > { %657 = vst.msk [vmem:[#allocation4 + $0x10] sm:$0xf] %vm592_vm8, %v651_v10  ;;  %v624_v12 = vpop.permute.xlu2 %623 }
 0x26b   : > { %620 = vst.msk [vmem:[#allocation3 + $0xc] sm:$0xf] %vm592_vm8, %v615_v11 }
 0x26c   : > { %630 = vst.msk [vmem:[#allocation4 + $0x8] sm:$0xf] %vm592_vm8, %v624_v12 }
 0x271   : > { %v644_v13 = vpop.permute.xlu1 %643  ;;  %v635_v14 = vpop.permute.xlu0 %634 }
 0x272   : > { %649 = vst.msk [vmem:[#allocation3 + $0x14] sm:$0xf] %vm592_vm8, %v644_v13  ;;  %v604_v15 = vpop.permute.xlu2 %603 }
 0x273   : > { %640 = vst.msk [vmem:[#allocation2 + $0x14] sm:$0xf] %vm592_vm8, %v635_v14 }
 0x274   : > { %609 = vst.msk [vmem:[#allocation2 + $0xc] sm:$0xf] %vm592_vm8, %v604_v15 }
 0x279   : > { %v671_v16 = vpop.permute.xlu1 %670  ;;  %v662_v17 = vpop.permute.xlu0 %661 }
 0x27a   : > { %676 = vst.msk [vmem:[#allocation3 + $0x1c] sm:$0xf] %vm592_vm8, %v671_v16  ;;  %v626_v18 = vpop.permute.xlu2 %625 }
 0x27b   : > { %667 = vst.msk [vmem:[#allocation2 + $0x1c] sm:$0xf] %vm592_vm8, %v662_v17 }
 0x27c   : > { %631 = vst.msk [vmem:[#allocation4 + $0xc] sm:$0xf] %vm592_vm8, %v626_v18 }
 0x281   : > { %v678_v19 = vpop.permute.xlu0 %677 }
 0x282   : > { %684 = vst.msk [vmem:[#allocation4 + $0x18] sm:$0xf] %vm592_vm8, %v678_v19  ;;  %v653_v20 = vpop.permute.xlu2 %652 }
 0x283   : > { %658 = vst.msk [vmem:[#allocation4 + $0x14] sm:$0xf] %vm592_vm8, %v653_v20 }
 0x28a   : > { %v680_v21 = vpop.permute.xlu2 %679 }
 0x28b   : > { %685 = vst.msk [vmem:[#allocation4 + $0x1c] sm:$0xf] %vm592_vm8, %v680_v21 }
 0x28c PF: > { %v1334_v22 = vld [vmem:[#allocation3] sm:$0xff]  ;;  %s2280_s2 = sld [smem:[#allocation22_spill]]  ;;  %vm701_vm9 = vcmask 64512   ;;  %v1336_v23 = vld [vmem:[#allocation3 + $0x8] sm:$0xff]  ;;  %v1338_v24 = vld [vmem:[#allocation3 + $0x10] sm:$0xff]  ;;  %vm721_vm10 = vcmask 130048  }
 0x28d   : > { %v706_v25 = vsel %vm701_vm9, %v1334_v22, 0  ;;  %v777_v26 = vsel %vm701_vm9, %v1336_v23, 0  ;;  %v887_v27 = vsel %vm701_vm9, %v1338_v24, 0  ;;  %v1335_v55 = vld [vmem:[#allocation4] sm:$0xff]  ;;  %v1337_v56 = vld [vmem:[#allocation4 + $0x8] sm:$0xff]  ;;  %v1339_v57 = vld [vmem:[#allocation4 + $0x10] sm:$0xff] }
 0x28e   : > { %715 = vmatpush.bf16.xpose.msra.mxu0 %v706_v25  ;;  %786 = vmatpush.bf16.xpose.msra.mxu2 %v777_v26  ;;  %v757_v58 = vld [vmem:[#allocation14] sm:$0xf]  ;;  %vm832_vm11 = vcmask 1043456   ;;  %v1340_v8 = vld [vmem:[#allocation3 + $0x18] sm:$0xff]  ;;  %s2281_s21 = sld [smem:[#allocation23_spill]]  ;;  %vm1058_vm12 = vcmask 261120  }
 0x28f   : > { %750 = vmatpush.bf16.msra.mxu1 %v1335_v55  ;;  %820 = vmatpush.bf16.msra.mxu3 %v1337_v56  ;;  %v853_v59 = vsel %vm832_vm11, %v757_v58, 0  ;;  %v978_v9 = vsel %vm701_vm9, %v1340_v8, 0  ;;  %v828_v10 = vld [vmem:[#allocation14 + $0x4] sm:$0xf]  ;;  %v938_v12 = vld [vmem:[#allocation14 + $0x8] sm:$0xf] }
 0x290   : > { %v834_v11 = vsel %vm832_vm11, %v828_v10, 0  ;;  %v943_v13 = vsel %vm832_vm11, %v938_v12, 0  ;;  %s2282_s25 = sld [smem:[#allocation32_spill]] }
 0x292   : > { %s1270_s18 = sshll.u32 %s2280_s2, 3 }
 0x293   : > { %s687_s8 = sshra.s32 %s1270_s18, 3  ;;  %862 = vmatpush.bf16.msrb.mxu3 %v853_v59  ;;  %843 = vmatpush.bf16.msrb.mxu1 %v834_v11  ;;  %s1050_s23 = scalar_lea.vmem %s2065_s4, %s1270_s18 [#allocation5] }
 0x294   : > { %s1271_s16 = sshll.u32 %s687_s8, 2  ;;  %s1323_s30 = sshll.u32 %s2281_s21, 1 }
 0x295   : > { %s2144_s7 = scalar_lea.vmem [#allocation2], %s1271_s16  ;;  %s1071_s22 = sadd.s32 %s2280_s2, %s1323_s30 }
 0x296   : > { %896 = vmatpush.bf16.xpose.msrb.mxu0 %v887_v27  ;;  %v691_v28 = vld [vmem:[%s2144_s7] sm:$0xf]  ;;  %v1283_v29 = vld [vmem:[%s2144_s7 + $0x8] sm:$0xf]  ;;  %v1297_v30 = vld [vmem:[%s2144_s7 + $0x10] sm:$0xf]  ;;  %930 = vmatpush.bf16.msrb.mxu2 %v1339_v57 }
 0x297   : > { %1276 = vmatmul.msk.bf16.vlgmr.msra.gmra.mxu0 %vm701_vm9, %v691_v28  ;;  %1288 = vmatmul.msk.bf16.vlgmr.msra.gmra.mxu2 %vm701_vm9, %v1283_v29  ;;  %v1310_v19 = vld [vmem:[%s2144_s7 + $0x18] sm:$0xf]  ;;  %s1324_s17 = sshll.u32 %s1071_s22, 3  ;;  %s2283_s16 = sld [smem:[#allocation33_spill]] }
 0x298   : > { %s1075_s21 = sshll.u32 %s420_s6, 4  ;;  %s2284_s4 = sand.u32 1, %s1806_s28   ;;  %s1076_s21 = int_to_ptr.vmem [resolvable:$true] %s1075_s21 }
 0x299   : > { %s1061_s2 = scalar_lea.sflag [#allocation7], %s2284_s4 }
 0x29d   : > { %s1073_s7 = scalar_lea.hbm %s2283_s16, %s1324_s17 }
 0x29e   : > { %s1077_s3 = sshll.u32 %s1073_s7, 4  ;;  %s1078_s3 = int_to_ptr.hbm [resolvable:$true] %s1077_s3 }
 0x29f   : > { %s1722_s18 = sshra.s32 %s1078_s3, 4  ;;  %s1723_s18 = int_to_ptr.hbm [resolvable:$true] %s1722_s18 }
 0x2a0   : > { %s1724_s30 = scalar_lea.hbm %s1723_s18, 8  ;;  %p1729_p13 = scmp.lt.s32.totalorder %s1723_s18, %s2283_s16 }
 0x2a1   : > { %p1725_p1 = scmp.ne.s32.totalorder %s1723_s18, %s1724_s30 }
 0x2a3   : > { %p1726_p11 = pnand %p1725_p1, %p2040_p7 }
 0x2a5   : > { %p1727_p12 = pneg %p1726_p11 }
 0x2a7   : > { %1302 = vmatmul.msk.bf16.vlgmr.msrb.gmra.mxu0 %vm701_vm9, %v1297_v30 }
 0x314   : > { %v717_v31 = vpop.f32.mrf.mxu0 }
 0x315   : > { %v722_v32 = vsel %vm721_vm10, %v717_v31, -inf }
 0x316   : > { %723 = vmax.xlane.f32.xlu0 %v722_v32 }
 0x31a   : > { %v788_v33 = vpop.f32.mrf.mxu2 }
 0x31b   : > { %v792_v34 = vsel %vm721_vm10, %v788_v33, -inf }
 0x31c   : > { %793 = vmax.xlane.f32.xlu1 %v792_v34  ;;  %v719_v35 = vpop.f32.mrf.mxu0 }
 0x31d   : > { %v1341_v35 = vld [vmem:[#allocation4 + $0x18] sm:$0xff] }
 0x31e   : > { %1021 = vmatpush.bf16.msra.mxu0 %v1341_v35 }
 0x322   : > { %v790_v36 = vpop.f32.mrf.mxu2 }
 0x324   : > { %v898_v37 = vpop.f32.mrf.mxu0 }
 0x325   : > { %v902_v38 = vsel %vm721_vm10, %v898_v37, -inf }
 0x326   : > { %903 = vmax.xlane.f32.xlu2 %v902_v38 }
 0x32c   : > { %v900_v39 = vpop.f32.mrf.mxu0 }
 0x389   : > { %v724_v40 = vpop.xlane.xlu0 %723 }
 0x38a   : > { %v725_v41 = vsub.f32 %v717_v31, %v724_v40 }
 0x38c   : > { %v726_v42 = vmul.f32 1.442695, %v725_v41  ;;  %v1029_v41 = vld [vmem:[#allocation14 + $0xc] sm:$0xf] }
 0x38e   : > { %1512 = vpow2.f32 %v726_v42  ;;  %v1034_v42 = vsel %vm832_vm11, %v1029_v41, 0 }
 0x38f   : > { %v794_v43 = vpop.xlane.xlu1 %793  ;;  %1043 = vmatpush.bf16.msra.mxu2 %v1034_v42 }
 0x390   : > { %v795_v44 = vsub.f32 %v788_v33, %v794_v43 }
 0x392   : > { %v796_v45 = vmul.f32 1.442695, %v795_v44 }
 0x394   : > { %v1513_v46 = vpop.eup %1512  ;;  %1514 = vpow2.f32 %v796_v45 }
 0x395   : > { %v728_v47 = vsel %vm721_vm10, %v1513_v46, 0.0 }
 0x396   : > { %729 = vadd.xlane.f32.xlu0 %v728_v47 }
 0x399   : > { %v904_v48 = vpop.xlane.xlu2 %903 }
 0x39a   : > { %v1515_v49 = vpop.eup %1514  ;;  %v905_v50 = vsub.f32 %v898_v37, %v904_v48 }
 0x39b   : > { %v798_v51 = vsel %vm721_vm10, %v1515_v49, 0.0 }
 0x39c   : > { %799 = vadd.xlane.f32.xlu1 %v798_v51  ;;  %v906_v52 = vmul.f32 1.442695, %v905_v50  ;;  %v1511_v50 = vld [vmem:[%s2282_s25] ss:$0 sm:$0xff] }
 0x39e   : > { %1516 = vpow2.f32 %v906_v52 }
 0x3a4   : > { %v1517_v53 = vpop.eup %1516 }
 0x3a5   : > { %v908_v54 = vsel %vm721_vm10, %v1517_v53, 0.0 }
 0x3a6   : > { %909 = vadd.xlane.f32.xlu0 %v908_v54 }
 0x409   : > { %v730_v60 = vpop.xlane.xlu0 %729 }
 0x40a   : > { %1518 = vrcp.f32 %v730_v60 }
 0x40f   : > { %v800_v61 = vpop.xlane.xlu1 %799 }
 0x410   : > { %v1519_v62 = vpop.eup %1518  ;;  %1520 = vrcp.f32 %v800_v61 }
 0x411   : > { %v732_v63 = vmul.f32 %v1519_v62, %v1513_v46 }
 0x413   : > { %v733_v0 = vpack.c.bf16 %v732_v63, %v732_v63 }
 0x415   : > { %1281 = vmatmul.msk.bf16.vlgmr.msra.gmra.mxu1 %vm721_vm10, %v733_v0 }
 0x416   : > { %v1521_v1 = vpop.eup %1520  ;;  %952 = vmatpush.bf16.msra.mxu1 %v943_v13 }
 0x417   : > { %v802_v2 = vmul.f32 %v1521_v1, %v1515_v49 }
 0x419   : > { %v803_v3 = vpack.c.bf16 %v802_v2, %v802_v2  ;;  %v910_v4 = vpop.xlane.xlu0 %909 }
 0x41a   : > { %1522 = vrcp.f32 %v910_v4 }
 0x41b   : > { %1293 = vmatmul.msk.bf16.vlgmr.msra.gmra.mxu3 %vm721_vm10, %v803_v3 }
 0x41c   : > { %987 = vmatpush.bf16.xpose.msra.mxu3 %v978_v9 }
 0x420   : > { %v1523_v5 = vpop.eup %1522 }
 0x421   : > { %v912_v6 = vmul.f32 %v1523_v5, %v1517_v53  ;;  %v1051_v53 = vld [vmem:[%s1050_s23] sm:$0xff]  ;;  %s1728_s23 = scalar_lea.hbm %s2283_s16, 32 }
 0x422   : > { %p1730_p0 = scmp.lt.s32.totalorder %s1728_s23, %s1724_s30 }
 0x423   : > { %v913_v7 = vpack.c.bf16 %v912_v6, %v912_v6 }
 0x424   : > { %p1731_p3 = por %p1730_p0, %p1729_p13 }
 0x425   : > { %1307 = vmatmul.msk.bf16.vlgmr.msrb.gmra.mxu2 %vm721_vm10, %v913_v7 }
 0x426   : > { %p1732_p5 = pnand %p1731_p3, %p1727_p12 }
 0x492   : > { %v752_v14 = vpop.f32.mrf.mxu1 }
 0x493   : > { %v756_v15 = vpack.c.bf16 %v752_v14, %v752_v14 }
 0x495   : > { %1295 = vmatmul.msk.bf16.vlgmr.msrb.gmra.mxu3 %vm701_vm9, %v756_v15 }
 0x49a   : > { %v754_v16 = vpop.f32.mrf.mxu1 }
 0x49e   : > { %v822_v17 = vpop.f32.mrf.mxu3 }
 0x49f   : > { %v826_v18 = vpack.c.bf16 %v822_v17, %v822_v17 }
 0x4a1   : > { %1294 = vmatmul.msk.bf16.vlgmr.msrb.gmra.mxu1 %vm701_vm9, %v826_v18 }
 0x4a5   : > { %1315 = vmatmul.msk.bf16.vlgmr.msra.gmra.mxu3 %vm701_vm9, %v1310_v19 }
 0x4a6   : > { %v824_v20 = vpop.f32.mrf.mxu3 }
 0x4a8   : > { %v932_v21 = vpop.f32.mrf.mxu2 }
 0x4a9   : > { %v936_v22 = vpack.c.bf16 %v932_v21, %v932_v21 }
 0x4b0   : > { %v934_v23 = vpop.f32.mrf.mxu2 }
 0x4b1   : > { %1308 = vmatmul.msk.bf16.vlgmr.msra.gmra.mxu1 %vm701_vm9, %v936_v22 }
 0x518   : > { %v864_v24 = vpop.f32.mrf.mxu3 }
 0x51e   : > { %v845_v25 = vpop.f32.mrf.mxu1 }
 0x51f   : > { %v865_v26 = vadd.f32 %v864_v24, %v845_v25 }
 0x520   : > { %v866_v27 = vpop.f32.mrf.mxu3 }
 0x526   : > { %v847_v28 = vpop.f32.mrf.mxu1 }
 0x528   : > { %v989_v29 = vpop.f32.mrf.mxu3 }
 0x529   : > { %v993_v30 = vsel %vm721_vm10, %v989_v29, -inf }
 0x52a   : > { %994 = vmax.xlane.f32.xlu2 %v993_v30 }
 0x52e   : > { %v954_v31 = vpop.f32.mrf.mxu1 }
 0x52f   : > { %v958_v32 = vadd.f32 %v954_v31, %v865_v26 }
 0x530   : > { %v991_v33 = vpop.f32.mrf.mxu3 }
 0x536   : > { %v956_v34 = vpop.f32.mrf.mxu1 }
 0x59d   : > { %v995_v36 = vpop.xlane.xlu2 %994 }
 0x59e   : > { %v996_v37 = vsub.f32 %v989_v29, %v995_v36 }
 0x5a0   : > { %v997_v38 = vmul.f32 1.442695, %v996_v37 }
 0x5a2   : > { %1524 = vpow2.f32 %v997_v38 }
 0x5a8   : > { %v1525_v39 = vpop.eup %1524 }
 0x5a9   : > { %v999_v40 = vsel %vm721_vm10, %v1525_v39, 0.0 }
 0x5aa   : > { %1000 = vadd.xlane.f32.xlu1 %v999_v40 }
 0x61d   : > { %v1001_v43 = vpop.xlane.xlu1 %1000 }
 0x61e   : > { %1526 = vrcp.f32 %v1001_v43 }
 0x624   : > { %v1527_v44 = vpop.eup %1526 }
 0x625   : > { %v1003_v45 = vmul.f32 %v1527_v44, %v1525_v39 }
 0x627   : > { %v1004_v46 = vpack.c.bf16 %v1003_v45, %v1003_v45 }
 0x629   : > { %1320 = vmatmul.msk.bf16.vlgmr.msra.gmra.mxu0 %vm721_vm10, %v1004_v46 }
 0x6a6   : > { %v1023_v47 = vpop.f32.mrf.mxu0 }
 0x6a7   : > { %v1027_v48 = vpack.c.bf16 %v1023_v47, %v1023_v47 }
 0x6a9   : > { %1321 = vmatmul.msk.bf16.vlgmr.msra.gmra.mxu2 %vm701_vm9, %v1027_v48 }
 0x6ae   : > { %v1025_v49 = vpop.f32.mrf.mxu0 }
 0x72c   : > { %v1045_v51 = vpop.f32.mrf.mxu2 }
 0x72d   : > { %v1049_v52 = vadd.f32 %v1045_v51, %v958_v32 }
 0x72f   : > { %v1056_v54 = vadd.f32 %v1511_v50, %v1049_v52 }
 0x731   : > { %v1057_v55 = vadd.f32 %v1056_v54, %v1051_v53 }
 0x733   : > { %1059 = vst.msk [vmem:[%s420_s6] sm:$0xff] %vm1058_vm12, %v1057_v55 }
 0x734   : > { %v1047_v56 = vpop.f32.mrf.mxu2 }
 0x735   : > { %1735 = shalt.err (!%p1732_p5)
}
 0x736   : > { %1364 = dma.vmem_to_hbm [thread:$0]  (%p2040_p7), %s1076_s21, 128, %s1078_s3, %s1061_s2  }
 0x737 PF: > { %p1401_p6 = scmp.ge.s32.totalorder %s1842_s15, 2  ;;  %s1089_s5 = sand.u32 1, %s1802_s27  }
 0x738   : > { %s1090_s6 = scalar_lea.sflag [#allocation7], %s1089_s5 }
 0x739   : > { %p1387_p8 = pnand %p1401_p6, %p2053_p10 }
 0x73b   : > { %p1388_p9 = pneg %p1387_p8 }
 0x73d   : > { %1797 = dma.done.wait (%p1388_p9), %s1090_s6, 128  }
 0x73e   : > { %1799 = vsyncadd (%p1388_p9), %s1090_s6, 4294967168  ;;  %s27_s15 = sadd.s32 1, %s1842_s15   ;;  %s2285_s24 = sld [smem:[#allocation24_spill]] }
 0x73f   : > { %p24_p2 = scmp.ge.s32.totalorder %s27_s15, 6   ;;  %s2286_s3 = sld [smem:[#allocation25_spill]] }
 0x740   : > { %s2287_s27 = smov %s1806_s28  ;;  %s2288_s28 = smov %s1810_s29 }
 0x741   : > { %s2289_s29 = smov %s2048_s19  ;;  %s2290_s30 = smov %s1818_s9 }
 0x742   : > { %s2291_s9 = smov %s1822_s10  ;;  %s2292_s10 = smov %s2045_s1 }
 0x743   : > { %s2293_s11 = smov %s1834_s13  ;;  %s2294_s12 = smov %s1838_s14 }
 0x744   : > { %s2295_s13 = smov %s2285_s24  ;;  %26 = sbr.rel (!%p24_p2) target bundleno = 21 (0x15), region = 144 }
 0x745   : > { %s2296_s14 = smov %s2286_s3 }
 0x749   :  { %1096 = vsyncpa [#allocation6], 1 }
 0x74a   :  { %1098 = vsyncpa [#allocation6 + $0x1], 1 }
 0x74b   :  { %1099 = vsyncpa [#allocation9], 1 }
 0x74c   :  { %1100 = vsyncpa [#allocation12], 1 }
 0x74d   :  { %1101 = vsyncpa [#allocation15], 1 }
 0x74e   :  { %1102 = vsyncpa [#allocation7], 1 }
 0x74f   :  { %1104 = vsyncpa [#allocation7 + $0x1], 1 }

</bundles_post_ra>
